<compile_context>
chip_gen: v7x
topology: tpu7x:2x2x1
jax: 0.10.0
libtpu: 0.0.40
codegen_flags: <defaults>
</compile_context>

<pallas_src>
import math

import jax
import jax.numpy as jnp
from jax.experimental import pallas as pl
from jax.experimental.pallas import tpu as pltpu

# Full-precision f32 matmuls everywhere (reference AND kernel) so the Mosaic MXU path
# and XLA's dot agree tightly; TPU default matmul precision is reduced (bf16 passes).
jax.config.update("jax_default_matmul_precision", "highest")

# ---- model config (small, consistent with the module) ----
B = 2            # batch
S = 8            # seq length
D = 32           # input_dim == embed_dim
NUM_HEADS = 4
HEAD_DIM = D // NUM_HEADS
FF = 64          # dim_feedforward
EPS = 1e-5
BS = B * S       # fused (batch * seq) row count
PACK_W = 3 * D   # lane width of the packed weight / constant operands (96)
NEG_INF = -1e9

# Row offsets inside the packed weight operand (all multiples of 8 sublanes).
WQKV_R = 0
WO_R = D           # 32
W1_R = 2 * D       # 64
W2_R = 3 * D       # 96
W_ROWS = 3 * D + FF    # 160
C_ROWS = 8 + BS        # 8 bias/gain rows + (BS, BS) additive mask

_PREC = jax.lax.Precision.HIGHEST


def encoder_block_kernel(x_ref, w_ref, c_ref, o_ref):
    """Whole EncoderBlock in a single kernel invocation (no grid)."""
    x = x_ref[...]                                   # (BS, D) f32

    # ---- packed constants: rows 0..7 bias/gain, rows 8..8+BS-1 additive attention mask ----
    bqkv = c_ref[0:1, :]                             # (1, 3D) (permuted, Q part pre-scaled)
    bo = c_ref[1:2, :D]
    g1 = c_ref[2:3, :D]
    be1 = c_ref[3:4, :D]
    b1 = c_ref[4:5, :FF]
    b2 = c_ref[5:6, :D]
    g2 = c_ref[6:7, :D]
    be2 = c_ref[7:8, :D]
    attn_mask = c_ref[8:8 + BS, :BS]                 # (BS, BS), 0 same-batch / -1e9 cross-batch

    # ---- qkv projection (softmax scale pre-folded into the Q columns on the host) ----
    wqkv = w_ref[WQKV_R:WQKV_R + D, :]               # (D, 3D)
    qkv = jnp.dot(x, wqkv, precision=_PREC,
                  preferred_element_type=jnp.float32) + bqkv              # (BS, 3D)

    # ---- multi-head attention: unrolled head loop, no stack/concat relayout ----
    # Q|K|V are contiguous D-wide blocks with heads contiguous inside each; per-head
    # PV results are folded directly into the output projection via the matching
    # sublane slice of W_o, so `values` is never materialized.
    attn = jnp.zeros((BS, D), jnp.float32)
    for h in range(NUM_HEADS):
        lo = h * HEAD_DIM
        q_h = qkv[:, 0 * D + lo: 0 * D + lo + HEAD_DIM]                   # (BS, hd)
        k_h = qkv[:, 1 * D + lo: 1 * D + lo + HEAD_DIM]                   # (BS, hd)
        v_h = qkv[:, 2 * D + lo: 2 * D + lo + HEAD_DIM]                   # (BS, hd)

        s = jax.lax.dot_general(q_h, k_h, (((1,), (1,)), ((), ())),
                                precision=_PREC,
                                preferred_element_type=jnp.float32)       # (BS, BS)
        s = s + attn_mask            # keep -1e9 mask coupled with max-subtraction below
        s = s - jnp.max(s, axis=-1, keepdims=True)
        p = jnp.exp(s)
        p = p / jnp.sum(p, axis=-1, keepdims=True)    # exact divide (no approx reciprocal)

        pv = jnp.dot(p, v_h, precision=_PREC,
                     preferred_element_type=jnp.float32)                  # (BS, hd)
        wo_h = w_ref[WO_R + lo: WO_R + lo + HEAD_DIM, :D]                 # (hd, D) sublane slice
        attn = attn + jnp.dot(pv, wo_h, precision=_PREC,
                              preferred_element_type=jnp.float32)
    attn = attn + bo

    # ---- residual + LayerNorm 1 (dropout = identity, eval mode) ----
    h1 = x + attn
    mu1 = jnp.mean(h1, axis=-1, keepdims=True)
    var1 = jnp.mean((h1 - mu1) ** 2, axis=-1, keepdims=True)
    x1 = (h1 - mu1) * jax.lax.rsqrt(var1 + EPS) * g1 + be1

    # ---- feedforward: Linear -> (Dropout=id) -> ReLU -> Linear ----
    w1 = w_ref[W1_R:W1_R + D, :FF]                   # (D, FF)
    w2 = w_ref[W2_R:W2_R + FF, :D]                   # (FF, D)
    f = jnp.maximum(jnp.dot(x1, w1, precision=_PREC,
                            preferred_element_type=jnp.float32) + b1, 0.0)
    ff = jnp.dot(f, w2, precision=_PREC,
                 preferred_element_type=jnp.float32) + b2

    # ---- residual + LayerNorm 2 ----
    h2 = x1 + ff
    mu2 = jnp.mean(h2, axis=-1, keepdims=True)
    var2 = jnp.mean((h2 - mu2) ** 2, axis=-1, keepdims=True)
    out = (h2 - mu2) * jax.lax.rsqrt(var2 + EPS) * g2 + be2

    o_ref[...] = out.astype(o_ref.dtype)


def encoder_block(x, prepared_params):
    """x: (B, S, D).  prepared_params: output of prepare_params()."""
    w_pack, c_pack = prepared_params
    xf = x.reshape(BS, D)            # flat (batch*seq, D) slab -> one kernel step, no grid
    vmem = pl.BlockSpec(memory_space=pltpu.MemorySpace.VMEM)
    out = pl.pallas_call(
        encoder_block_kernel,
        out_shape=jax.ShapeDtypeStruct((BS, D), x.dtype),
        in_specs=[vmem, vmem, vmem],
        out_specs=vmem,
    )(xf, w_pack, c_pack)
    return out.reshape(B, S, D)


def prepare_params(params):
    """One-time host-side prep:
       * permute qkv columns from per-head interleaved [q|k|v] to contiguous [Q|K|V]
         (heads contiguous inside each D-wide block) and fold 1/sqrt(head_dim) into Q,
       * pack wqkv|wo|w1|w2 into one sublane-stacked, lane-padded (160, 96) operand,
       * pack the eight bias/gain vectors plus the precomputed (BS,BS) additive
         cross-batch mask into one (24, 96) constant operand."""
    (wqkv, bqkv, wo, bo, g1, be1, w1, b1, w2, b2, g2, be2) = params

    perm = jnp.asarray([h * 3 * HEAD_DIM + part * HEAD_DIM + d
                        for part in range(3)
                        for h in range(NUM_HEADS)
                        for d in range(HEAD_DIM)], dtype=jnp.int32)
    scale = 1.0 / math.sqrt(HEAD_DIM)
    wqkv_p = wqkv[:, perm].at[:, :D].multiply(scale)
    bqkv_p = bqkv[:, perm].at[:, :D].multiply(scale)

    def pad_cols(w):
        return jnp.pad(w, ((0, 0), (0, PACK_W - w.shape[1])))

    w_pack = jnp.concatenate(
        [pad_cols(wqkv_p), pad_cols(wo), pad_cols(w1), pad_cols(w2)], axis=0)   # (160, 96)
    assert w_pack.shape == (W_ROWS, PACK_W)

    def row(vec):
        vec = vec.reshape(-1)
        return jnp.pad(vec, (0, PACK_W - vec.shape[0]))

    bias_rows = jnp.stack([row(bqkv_p), row(bo), row(g1), row(be1),
                           row(b1), row(b2), row(g2), row(be2)], axis=0)        # (8, 96)
    batch_id = jnp.arange(BS, dtype=jnp.int32) // S
    mask = jnp.where(batch_id[:, None] == batch_id[None, :], 0.0, NEG_INF)
    mask_rows = jnp.pad(mask.astype(jnp.float32), ((0, 0), (0, PACK_W - BS)))   # (16, 96)
    c_pack = jnp.concatenate([bias_rows, mask_rows], axis=0)                    # (24, 96)
    assert c_pack.shape == (C_ROWS, PACK_W)
    return (w_pack, c_pack)


def make_params(key):
    """Deterministic parameter init (xavier-uniform for attn projections,
    small uniform for FFN, ones/zeros for LayerNorm). Stored as (in, out)."""
    ks = jax.random.split(key, 4)

    def xavier(k, fan_in, fan_out):
        lim = math.sqrt(6.0 / (fan_in + fan_out))
        return jax.random.uniform(k, (fan_in, fan_out), jnp.float32, -lim, lim)

    wqkv = xavier(ks[0], D, 3 * D)
    bqkv = jnp.zeros((1, 3 * D), jnp.float32)
    wo = xavier(ks[1], D, D)
    bo = jnp.zeros((1, D), jnp.float32)
    g1 = jnp.ones((1, D), jnp.float32)
    be1 = jnp.zeros((1, D), jnp.float32)
    lim1 = 1.0 / math.sqrt(D)
    w1 = jax.random.uniform(ks[2], (D, FF), jnp.float32, -lim1, lim1)
    b1 = jnp.zeros((1, FF), jnp.float32)
    lim2 = 1.0 / math.sqrt(FF)
    w2 = jax.random.uniform(ks[3], (FF, D), jnp.float32, -lim2, lim2)
    b2 = jnp.zeros((1, D), jnp.float32)
    g2 = jnp.ones((1, D), jnp.float32)
    be2 = jnp.zeros((1, D), jnp.float32)
    return (wqkv, bqkv, wo, bo, g1, be1, w1, b1, w2, b2, g2, be2)


def encoder_block_ref(x, params):
    """Pure-JAX reference mirroring the PyTorch forward (eval mode, original layout)."""
    (wqkv, bqkv, wo, bo, g1, be1, w1, b1, w2, b2, g2, be2) = params
    qkv = x @ wqkv + bqkv[0]                              # (B, S, 3D)
    qkv = qkv.reshape(B, S, NUM_HEADS, 3 * HEAD_DIM).transpose(0, 2, 1, 3)
    q, k, v = jnp.split(qkv, 3, axis=-1)
    s = jnp.einsum("bhqd,bhkd->bhqk", q, k, precision=_PREC) / math.sqrt(HEAD_DIM)
    p = jax.nn.softmax(s, axis=-1)
    vals = jnp.einsum("bhqk,bhkd->bhqd", p, v,
                      precision=_PREC).transpose(0, 2, 1, 3).reshape(B, S, D)
    attn_out = vals @ wo + bo[0]

    def ln(y, g, b):
        mu = jnp.mean(y, axis=-1, keepdims=True)
        var = jnp.mean((y - mu) ** 2, axis=-1, keepdims=True)
        return (y - mu) * jax.lax.rsqrt(var + EPS) * g[0] + b[0]

    x1 = ln(x + attn_out, g1, be1)
    ff = jnp.maximum(x1 @ w1 + b1[0], 0.0) @ w2 + b2[0]
    return ln(x1 + ff, g2, be2)


if __name__ == "__main__":
    key = jax.random.PRNGKey(0)
    kx, kp = jax.random.split(key)
    x = jax.random.normal(kx, (B, S, D), jnp.float32)
    params = make_params(kp)
    prepared = prepare_params(params)      # one-time weight prep, not per-call work

    out = jax.block_until_ready(encoder_block(x, prepared))

    ref = encoder_block_ref(x, params)
    assert out.shape == (B, S, D)
    # Exact softmax divide + HIGHEST-precision f32 matmuls on both sides -> only
    # op-ordering differences remain; 2e-4 gives ~10x margin while catching real bugs.
    assert jnp.allclose(out, ref, atol=2e-4, rtol=2e-4), "mismatch vs JAX reference"
    print("KERNEL_OK")
</pallas_src>

<mosaic_0001>
module attributes {stable_mosaic.version = 11 : i64} {
  func.func @encoder_block_kernel(%arg0: memref<16x32xf32, #tpu.memory_space<vmem>>, %arg1: memref<160x96xf32, #tpu.memory_space<vmem>>, %arg2: memref<24x96xf32, #tpu.memory_space<vmem>>, %arg3: memref<16x32xf32, #tpu.memory_space<vmem>>) attributes {dimension_semantics = [], scalar_prefetch = 0 : i64, scratch_operands = 0 : i64, tpu.core_type = #tpu.core_type<tc>} {
    %c0 = arith.constant 0 : index
    %c0_0 = arith.constant 0 : index
    %0 = vector.load %arg0[%c0, %c0_0] : memref<16x32xf32, #tpu.memory_space<vmem>>, vector<16x32xf32>
    %c0_1 = arith.constant 0 : index
    %c0_2 = arith.constant 0 : index
    %1 = vector.load %arg2[%c0_1, %c0_2] : memref<24x96xf32, #tpu.memory_space<vmem>>, vector<1x96xf32>
    %c1 = arith.constant 1 : index
    %c0_3 = arith.constant 0 : index
    %2 = vector.load %arg2[%c1, %c0_3] : memref<24x96xf32, #tpu.memory_space<vmem>>, vector<1x32xf32>
    %c2 = arith.constant 2 : index
    %c0_4 = arith.constant 0 : index
    %3 = vector.load %arg2[%c2, %c0_4] : memref<24x96xf32, #tpu.memory_space<vmem>>, vector<1x32xf32>
    %c3 = arith.constant 3 : index
    %c0_5 = arith.constant 0 : index
    %4 = vector.load %arg2[%c3, %c0_5] : memref<24x96xf32, #tpu.memory_space<vmem>>, vector<1x32xf32>
    %c4 = arith.constant 4 : index
    %c0_6 = arith.constant 0 : index
    %5 = vector.load %arg2[%c4, %c0_6] : memref<24x96xf32, #tpu.memory_space<vmem>>, vector<1x64xf32>
    %c5 = arith.constant 5 : index
    %c0_7 = arith.constant 0 : index
    %6 = vector.load %arg2[%c5, %c0_7] : memref<24x96xf32, #tpu.memory_space<vmem>>, vector<1x32xf32>
    %c6 = arith.constant 6 : index
    %c0_8 = arith.constant 0 : index
    %7 = vector.load %arg2[%c6, %c0_8] : memref<24x96xf32, #tpu.memory_space<vmem>>, vector<1x32xf32>
    %c7 = arith.constant 7 : index
    %c0_9 = arith.constant 0 : index
    %8 = vector.load %arg2[%c7, %c0_9] : memref<24x96xf32, #tpu.memory_space<vmem>>, vector<1x32xf32>
    %c8 = arith.constant 8 : index
    %c0_10 = arith.constant 0 : index
    %9 = vector.load %arg2[%c8, %c0_10] : memref<24x96xf32, #tpu.memory_space<vmem>>, vector<16x16xf32>
    %c0_11 = arith.constant 0 : index
    %c0_12 = arith.constant 0 : index
    %10 = vector.load %arg1[%c0_11, %c0_12] : memref<160x96xf32, #tpu.memory_space<vmem>>, vector<32x96xf32>
    %cst = arith.constant dense<0.000000e+00> : vector<16x96xf32>
    %11 = tpu.matmul %0, %10, %cst {dimension_numbers = #tpu.dot_dimension_numbers<[1], [0], [0], [1], [0, 0, 1, 1], [], []>, precision = #tpu.contract_precision<fp32>} : vector<16x32xf32>, vector<32x96xf32>, vector<16x96xf32> -> vector<16x96xf32>
    %12 = vector.broadcast %1 : vector<1x96xf32> to vector<16x96xf32>
    %13 = arith.addf %11, %12 : vector<16x96xf32>
    %cst_13 = arith.constant 0.000000e+00 : f32
    %14 = vector.broadcast %cst_13 : f32 to vector<16x32xf32>
    %15 = vector.extract_strided_slice %13 {offsets = [0, 0], sizes = [16, 8], strides = [1, 1]} : vector<16x96xf32> to vector<16x8xf32>
    %16 = vector.extract_strided_slice %13 {offsets = [0, 32], sizes = [16, 8], strides = [1, 1]} : vector<16x96xf32> to vector<16x8xf32>
    %17 = vector.extract_strided_slice %13 {offsets = [0, 64], sizes = [16, 8], strides = [1, 1]} : vector<16x96xf32> to vector<16x8xf32>
    %cst_14 = arith.constant dense<0.000000e+00> : vector<16x16xf32>
    %18 = tpu.matmul %15, %16, %cst_14 {dimension_numbers = #tpu.dot_dimension_numbers<[1], [1], [0], [0], [0, 0, 1, 0], [], []>, precision = #tpu.contract_precision<fp32>} : vector<16x8xf32>, vector<16x8xf32>, vector<16x16xf32> -> vector<16x16xf32>
    %19 = arith.addf %18, %9 : vector<16x16xf32>
    %cst_15 = arith.constant dense<0xFF800000> : vector<16xf32>
    %20 = vector.multi_reduction <maximumf>, %19, %cst_15 [1] : vector<16x16xf32> to vector<16xf32>
    %21 = vector.shape_cast %20 : vector<16xf32> to vector<16x1xf32>
    %22 = vector.broadcast %21 : vector<16x1xf32> to vector<16x16xf32>
    %23 = arith.subf %19, %22 : vector<16x16xf32>
    %24 = math.exp %23 : vector<16x16xf32>
    %cst_16 = arith.constant dense<0.000000e+00> : vector<16xf32>
    %25 = vector.multi_reduction <add>, %24, %cst_16 [1] : vector<16x16xf32> to vector<16xf32>
    %26 = vector.shape_cast %25 : vector<16xf32> to vector<16x1xf32>
    %27 = vector.broadcast %26 : vector<16x1xf32> to vector<16x16xf32>
    %28 = arith.divf %24, %27 : vector<16x16xf32>
    %cst_17 = arith.constant dense<0.000000e+00> : vector<16x8xf32>
    %29 = tpu.matmul %28, %17, %cst_17 {dimension_numbers = #tpu.dot_dimension_numbers<[1], [0], [0], [1], [0, 0, 1, 1], [], []>, precision = #tpu.contract_precision<fp32>} : vector<16x16xf32>, vector<16x8xf32>, vector<16x8xf32> -> vector<16x8xf32>
    %c32 = arith.constant 32 : index
    %c0_18 = arith.constant 0 : index
    %30 = vector.load %arg1[%c32, %c0_18] : memref<160x96xf32, #tpu.memory_space<vmem>>, vector<8x32xf32>
    %cst_19 = arith.constant dense<0.000000e+00> : vector<16x32xf32>
    %31 = tpu.matmul %29, %30, %cst_19 {dimension_numbers = #tpu.dot_dimension_numbers<[1], [0], [0], [1], [0, 0, 1, 1], [], []>, precision = #tpu.contract_precision<fp32>} : vector<16x8xf32>, vector<8x32xf32>, vector<16x32xf32> -> vector<16x32xf32>
    %32 = arith.addf %14, %31 : vector<16x32xf32>
    %33 = vector.extract_strided_slice %13 {offsets = [0, 8], sizes = [16, 8], strides = [1, 1]} : vector<16x96xf32> to vector<16x8xf32>
    %34 = vector.extract_strided_slice %13 {offsets = [0, 40], sizes = [16, 8], strides = [1, 1]} : vector<16x96xf32> to vector<16x8xf32>
    %35 = vector.extract_strided_slice %13 {offsets = [0, 72], sizes = [16, 8], strides = [1, 1]} : vector<16x96xf32> to vector<16x8xf32>
    %cst_20 = arith.constant dense<0.000000e+00> : vector<16x16xf32>
    %36 = tpu.matmul %33, %34, %cst_20 {dimension_numbers = #tpu.dot_dimension_numbers<[1], [1], [0], [0], [0, 0, 1, 0], [], []>, precision = #tpu.contract_precision<fp32>} : vector<16x8xf32>, vector<16x8xf32>, vector<16x16xf32> -> vector<16x16xf32>
    %37 = arith.addf %36, %9 : vector<16x16xf32>
    %cst_21 = arith.constant dense<0xFF800000> : vector<16xf32>
    %38 = vector.multi_reduction <maximumf>, %37, %cst_21 [1] : vector<16x16xf32> to vector<16xf32>
    %39 = vector.shape_cast %38 : vector<16xf32> to vector<16x1xf32>
    %40 = vector.broadcast %39 : vector<16x1xf32> to vector<16x16xf32>
    %41 = arith.subf %37, %40 : vector<16x16xf32>
    %42 = math.exp %41 : vector<16x16xf32>
    %cst_22 = arith.constant dense<0.000000e+00> : vector<16xf32>
    %43 = vector.multi_reduction <add>, %42, %cst_22 [1] : vector<16x16xf32> to vector<16xf32>
    %44 = vector.shape_cast %43 : vector<16xf32> to vector<16x1xf32>
    %45 = vector.broadcast %44 : vector<16x1xf32> to vector<16x16xf32>
    %46 = arith.divf %42, %45 : vector<16x16xf32>
    %cst_23 = arith.constant dense<0.000000e+00> : vector<16x8xf32>
    %47 = tpu.matmul %46, %35, %cst_23 {dimension_numbers = #tpu.dot_dimension_numbers<[1], [0], [0], [1], [0, 0, 1, 1], [], []>, precision = #tpu.contract_precision<fp32>} : vector<16x16xf32>, vector<16x8xf32>, vector<16x8xf32> -> vector<16x8xf32>
    %c40 = arith.constant 40 : index
    %c0_24 = arith.constant 0 : index
    %48 = vector.load %arg1[%c40, %c0_24] : memref<160x96xf32, #tpu.memory_space<vmem>>, vector<8x32xf32>
    %cst_25 = arith.constant dense<0.000000e+00> : vector<16x32xf32>
    %49 = tpu.matmul %47, %48, %cst_25 {dimension_numbers = #tpu.dot_dimension_numbers<[1], [0], [0], [1], [0, 0, 1, 1], [], []>, precision = #tpu.contract_precision<fp32>} : vector<16x8xf32>, vector<8x32xf32>, vector<16x32xf32> -> vector<16x32xf32>
    %50 = arith.addf %32, %49 : vector<16x32xf32>
    %51 = vector.extract_strided_slice %13 {offsets = [0, 16], sizes = [16, 8], strides = [1, 1]} : vector<16x96xf32> to vector<16x8xf32>
    %52 = vector.extract_strided_slice %13 {offsets = [0, 48], sizes = [16, 8], strides = [1, 1]} : vector<16x96xf32> to vector<16x8xf32>
    %53 = vector.extract_strided_slice %13 {offsets = [0, 80], sizes = [16, 8], strides = [1, 1]} : vector<16x96xf32> to vector<16x8xf32>
    %cst_26 = arith.constant dense<0.000000e+00> : vector<16x16xf32>
    %54 = tpu.matmul %51, %52, %cst_26 {dimension_numbers = #tpu.dot_dimension_numbers<[1], [1], [0], [0], [0, 0, 1, 0], [], []>, precision = #tpu.contract_precision<fp32>} : vector<16x8xf32>, vector<16x8xf32>, vector<16x16xf32> -> vector<16x16xf32>
    %55 = arith.addf %54, %9 : vector<16x16xf32>
    %cst_27 = arith.constant dense<0xFF800000> : vector<16xf32>
    %56 = vector.multi_reduction <maximumf>, %55, %cst_27 [1] : vector<16x16xf32> to vector<16xf32>
    %57 = vector.shape_cast %56 : vector<16xf32> to vector<16x1xf32>
    %58 = vector.broadcast %57 : vector<16x1xf32> to vector<16x16xf32>
    %59 = arith.subf %55, %58 : vector<16x16xf32>
    %60 = math.exp %59 : vector<16x16xf32>
    %cst_28 = arith.constant dense<0.000000e+00> : vector<16xf32>
    %61 = vector.multi_reduction <add>, %60, %cst_28 [1] : vector<16x16xf32> to vector<16xf32>
    %62 = vector.shape_cast %61 : vector<16xf32> to vector<16x1xf32>
    %63 = vector.broadcast %62 : vector<16x1xf32> to vector<16x16xf32>
    %64 = arith.divf %60, %63 : vector<16x16xf32>
    %cst_29 = arith.constant dense<0.000000e+00> : vector<16x8xf32>
    %65 = tpu.matmul %64, %53, %cst_29 {dimension_numbers = #tpu.dot_dimension_numbers<[1], [0], [0], [1], [0, 0, 1, 1], [], []>, precision = #tpu.contract_precision<fp32>} : vector<16x16xf32>, vector<16x8xf32>, vector<16x8xf32> -> vector<16x8xf32>
    %c48 = arith.constant 48 : index
    %c0_30 = arith.constant 0 : index
    %66 = vector.load %arg1[%c48, %c0_30] : memref<160x96xf32, #tpu.memory_space<vmem>>, vector<8x32xf32>
    %cst_31 = arith.constant dense<0.000000e+00> : vector<16x32xf32>
    %67 = tpu.matmul %65, %66, %cst_31 {dimension_numbers = #tpu.dot_dimension_numbers<[1], [0], [0], [1], [0, 0, 1, 1], [], []>, precision = #tpu.contract_precision<fp32>} : vector<16x8xf32>, vector<8x32xf32>, vector<16x32xf32> -> vector<16x32xf32>
    %68 = arith.addf %50, %67 : vector<16x32xf32>
    %69 = vector.extract_strided_slice %13 {offsets = [0, 24], sizes = [16, 8], strides = [1, 1]} : vector<16x96xf32> to vector<16x8xf32>
    %70 = vector.extract_strided_slice %13 {offsets = [0, 56], sizes = [16, 8], strides = [1, 1]} : vector<16x96xf32> to vector<16x8xf32>
    %71 = vector.extract_strided_slice %13 {offsets = [0, 88], sizes = [16, 8], strides = [1, 1]} : vector<16x96xf32> to vector<16x8xf32>
    %cst_32 = arith.constant dense<0.000000e+00> : vector<16x16xf32>
    %72 = tpu.matmul %69, %70, %cst_32 {dimension_numbers = #tpu.dot_dimension_numbers<[1], [1], [0], [0], [0, 0, 1, 0], [], []>, precision = #tpu.contract_precision<fp32>} : vector<16x8xf32>, vector<16x8xf32>, vector<16x16xf32> -> vector<16x16xf32>
    %73 = arith.addf %72, %9 : vector<16x16xf32>
    %cst_33 = arith.constant dense<0xFF800000> : vector<16xf32>
    %74 = vector.multi_reduction <maximumf>, %73, %cst_33 [1] : vector<16x16xf32> to vector<16xf32>
    %75 = vector.shape_cast %74 : vector<16xf32> to vector<16x1xf32>
    %76 = vector.broadcast %75 : vector<16x1xf32> to vector<16x16xf32>
    %77 = arith.subf %73, %76 : vector<16x16xf32>
    %78 = math.exp %77 : vector<16x16xf32>
    %cst_34 = arith.constant dense<0.000000e+00> : vector<16xf32>
    %79 = vector.multi_reduction <add>, %78, %cst_34 [1] : vector<16x16xf32> to vector<16xf32>
    %80 = vector.shape_cast %79 : vector<16xf32> to vector<16x1xf32>
    %81 = vector.broadcast %80 : vector<16x1xf32> to vector<16x16xf32>
    %82 = arith.divf %78, %81 : vector<16x16xf32>
    %cst_35 = arith.constant dense<0.000000e+00> : vector<16x8xf32>
    %83 = tpu.matmul %82, %71, %cst_35 {dimension_numbers = #tpu.dot_dimension_numbers<[1], [0], [0], [1], [0, 0, 1, 1], [], []>, precision = #tpu.contract_precision<fp32>} : vector<16x16xf32>, vector<16x8xf32>, vector<16x8xf32> -> vector<16x8xf32>
    %c56 = arith.constant 56 : index
    %c0_36 = arith.constant 0 : index
    %84 = vector.load %arg1[%c56, %c0_36] : memref<160x96xf32, #tpu.memory_space<vmem>>, vector<8x32xf32>
    %cst_37 = arith.constant dense<0.000000e+00> : vector<16x32xf32>
    %85 = tpu.matmul %83, %84, %cst_37 {dimension_numbers = #tpu.dot_dimension_numbers<[1], [0], [0], [1], [0, 0, 1, 1], [], []>, precision = #tpu.contract_precision<fp32>} : vector<16x8xf32>, vector<8x32xf32>, vector<16x32xf32> -> vector<16x32xf32>
    %86 = arith.addf %68, %85 : vector<16x32xf32>
    %87 = vector.broadcast %2 : vector<1x32xf32> to vector<16x32xf32>
    %88 = arith.addf %86, %87 : vector<16x32xf32>
    %89 = arith.addf %0, %88 : vector<16x32xf32>
    %cst_38 = arith.constant dense<0.000000e+00> : vector<16xf32>
    %90 = vector.multi_reduction <add>, %89, %cst_38 [1] : vector<16x32xf32> to vector<16xf32>
    %91 = vector.shape_cast %90 : vector<16xf32> to vector<16x1xf32>
    %cst_39 = arith.constant 3.200000e+01 : f32
    %92 = vector.broadcast %cst_39 : f32 to vector<16x1xf32>
    %93 = arith.divf %91, %92 : vector<16x1xf32>
    %94 = vector.broadcast %93 : vector<16x1xf32> to vector<16x32xf32>
    %95 = arith.subf %89, %94 : vector<16x32xf32>
    %96 = arith.mulf %95, %95 : vector<16x32xf32>
    %cst_40 = arith.constant dense<0.000000e+00> : vector<16xf32>
    %97 = vector.multi_reduction <add>, %96, %cst_40 [1] : vector<16x32xf32> to vector<16xf32>
    %98 = vector.shape_cast %97 : vector<16xf32> to vector<16x1xf32>
    %cst_41 = arith.constant 3.200000e+01 : f32
    %99 = vector.broadcast %cst_41 : f32 to vector<16x1xf32>
    %100 = arith.divf %98, %99 : vector<16x1xf32>
    %101 = vector.broadcast %93 : vector<16x1xf32> to vector<16x32xf32>
    %102 = arith.subf %89, %101 : vector<16x32xf32>
    %cst_42 = arith.constant 9.99999974E-6 : f32
    %103 = vector.broadcast %cst_42 : f32 to vector<16x1xf32>
    %104 = arith.addf %100, %103 : vector<16x1xf32>
    %105 = math.rsqrt %104 : vector<16x1xf32>
    %106 = vector.broadcast %105 : vector<16x1xf32> to vector<16x32xf32>
    %107 = arith.mulf %102, %106 : vector<16x32xf32>
    %108 = vector.broadcast %3 : vector<1x32xf32> to vector<16x32xf32>
    %109 = arith.mulf %107, %108 : vector<16x32xf32>
    %110 = vector.broadcast %4 : vector<1x32xf32> to vector<16x32xf32>
    %111 = arith.addf %109, %110 : vector<16x32xf32>
    %c64 = arith.constant 64 : index
    %c0_43 = arith.constant 0 : index
    %112 = vector.load %arg1[%c64, %c0_43] : memref<160x96xf32, #tpu.memory_space<vmem>>, vector<32x64xf32>
    %c96 = arith.constant 96 : index
    %c0_44 = arith.constant 0 : index
    %113 = vector.load %arg1[%c96, %c0_44] : memref<160x96xf32, #tpu.memory_space<vmem>>, vector<64x32xf32>
    %cst_45 = arith.constant dense<0.000000e+00> : vector<16x64xf32>
    %114 = tpu.matmul %111, %112, %cst_45 {dimension_numbers = #tpu.dot_dimension_numbers<[1], [0], [0], [1], [0, 0, 1, 1], [], []>, precision = #tpu.contract_precision<fp32>} : vector<16x32xf32>, vector<32x64xf32>, vector<16x64xf32> -> vector<16x64xf32>
    %115 = vector.broadcast %5 : vector<1x64xf32> to vector<16x64xf32>
    %116 = arith.addf %114, %115 : vector<16x64xf32>
    %cst_46 = arith.constant 0.000000e+00 : f32
    %117 = vector.broadcast %cst_46 : f32 to vector<16x64xf32>
    %118 = arith.maximumf %116, %117 : vector<16x64xf32>
    %cst_47 = arith.constant dense<0.000000e+00> : vector<16x32xf32>
    %119 = tpu.matmul %118, %113, %cst_47 {dimension_numbers = #tpu.dot_dimension_numbers<[1], [0], [0], [1], [0, 0, 1, 1], [], []>, precision = #tpu.contract_precision<fp32>} : vector<16x64xf32>, vector<64x32xf32>, vector<16x32xf32> -> vector<16x32xf32>
    %120 = vector.broadcast %6 : vector<1x32xf32> to vector<16x32xf32>
    %121 = arith.addf %119, %120 : vector<16x32xf32>
    %122 = arith.addf %111, %121 : vector<16x32xf32>
    %cst_48 = arith.constant dense<0.000000e+00> : vector<16xf32>
    %123 = vector.multi_reduction <add>, %122, %cst_48 [1] : vector<16x32xf32> to vector<16xf32>
    %124 = vector.shape_cast %123 : vector<16xf32> to vector<16x1xf32>
    %cst_49 = arith.constant 3.200000e+01 : f32
    %125 = vector.broadcast %cst_49 : f32 to vector<16x1xf32>
    %126 = arith.divf %124, %125 : vector<16x1xf32>
    %127 = vector.broadcast %126 : vector<16x1xf32> to vector<16x32xf32>
    %128 = arith.subf %122, %127 : vector<16x32xf32>
    %129 = arith.mulf %128, %128 : vector<16x32xf32>
    %cst_50 = arith.constant dense<0.000000e+00> : vector<16xf32>
    %130 = vector.multi_reduction <add>, %129, %cst_50 [1] : vector<16x32xf32> to vector<16xf32>
    %131 = vector.shape_cast %130 : vector<16xf32> to vector<16x1xf32>
    %cst_51 = arith.constant 3.200000e+01 : f32
    %132 = vector.broadcast %cst_51 : f32 to vector<16x1xf32>
    %133 = arith.divf %131, %132 : vector<16x1xf32>
    %134 = vector.broadcast %126 : vector<16x1xf32> to vector<16x32xf32>
    %135 = arith.subf %122, %134 : vector<16x32xf32>
    %cst_52 = arith.constant 9.99999974E-6 : f32
    %136 = vector.broadcast %cst_52 : f32 to vector<16x1xf32>
    %137 = arith.addf %133, %136 : vector<16x1xf32>
    %138 = math.rsqrt %137 : vector<16x1xf32>
    %139 = vector.broadcast %138 : vector<16x1xf32> to vector<16x32xf32>
    %140 = arith.mulf %135, %139 : vector<16x32xf32>
    %141 = vector.broadcast %7 : vector<1x32xf32> to vector<16x32xf32>
    %142 = arith.mulf %140, %141 : vector<16x32xf32>
    %143 = vector.broadcast %8 : vector<1x32xf32> to vector<16x32xf32>
    %144 = arith.addf %142, %143 : vector<16x32xf32>
    %c0_53 = arith.constant 0 : index
    %c0_54 = arith.constant 0 : index
    %145 = vector.load %arg3[%c0_53, %c0_54] : memref<16x32xf32, #tpu.memory_space<vmem>>, vector<16x32xf32>
    tpu.vector_store %arg3[%c0_53, %c0_54], %144 {strides = array<i32>} : memref<16x32xf32, #tpu.memory_space<vmem>>, vector<16x32xf32>,
    return
  }
}

</mosaic_0001>

<bundles_post_ra>
// kernel: tpu_custom_call.1
= control target key start
LH: loop header
LB: loop body
LE: loop exit
PB: predicated region body
PF: predicated region fallthrough
CT: control target
= control target key end

     0   :  { %8 = vsyncpa [#allocation3], 0  ;;  %s10357_s0 = inlined_call_operand.hbm [shape: f32[16,32], index: 0, kind: input, shape index: {}]   ;;  %s10358_s1 = inlined_call_operand.hbm [shape: f32[160,96], index: 1, kind: input, shape index: {}]   ;;  %s10359_s2 = inlined_call_operand.hbm [shape: f32[24,96], index: 2, kind: input, shape index: {}]   ;;  %s10360_s3 = inlined_call_operand.hbm [shape: f32[16,32], index: 3, kind: output, shape index: {}]  }
   0x1   :  { %9 = vsyncpa [#allocation6], 0 }
   0x2   :  { %10 = vsyncpa [#allocation4], 0  ;;  %s9878_s12 = smov [#allocation5]   ;;  %s9879_s14 = smov [#allocation2]  }
   0x3   :  { %s28_s13 = sshll.u32 %s9878_s12, 4  ;;  %s16_s15 = sshll.u32 %s9879_s14, 4  ;;  %s29_s13 = int_to_ptr.vmem [resolvable:$true] %s28_s13  ;;  %s9915_s15 = int_to_ptr.vmem [resolvable:$true] %s16_s15 }
   0x4   :  { %s9784_s18 = scalar_lea.hbm %s10358_s1, 2560 }
   0x5   :  { %p9785_p0 = scmp.ne.s32.totalorder %s10358_s1, %s9784_s18  ;;  %p9788_p1 = scmp.lt.u32.totalorder %s9784_s18, %s10358_s1 }
   0x7   :  { %p9790_p2 = pnand %p9788_p1, %p9785_p0 }
   0x9   :  { %9793 = shalt.err (!%p9790_p2)
}
   0xa   :  { %s9794_s23 = scalar_lea.vmem %s29_s13, 2560  ;;  %p9799_p4 = scmp.lt.s32.totalorder %s29_s13, %s29_s13 }
   0xb   :  { %p9795_p3 = scmp.ne.s32.totalorder %s29_s13, %s9794_s23  ;;  %p9800_p5 = scmp.lt.s32.totalorder %s9794_s23, %s9794_s23 }
   0xd   :  { %p9801_p6 = por %p9800_p5, %p9799_p4 }
   0xf   :  { %p9802_p7 = pnand %p9801_p6, %p9795_p3 }
  0x11   :  { %9805 = shalt.err (!%p9802_p7)
}
  0x12   :  { %s9880_s24 = smov 128   ;;  %s9881_s25 = smov 8  }
  0x13   :  { %34 = dma.hbm_to_vmem [thread:$0]  %s10358_s1, 2560, %s29_s13, [#allocation6], %s9880_s24, %s9880_s24, %s9881_s25  }
  0x14   :  { %s9806_s30 = scalar_lea.hbm %s10357_s0, 256 }
  0x15   :  { %p9807_p8 = scmp.ne.s32.totalorder %s10357_s0, %s9806_s30  ;;  %p9810_p9 = scmp.lt.u32.totalorder %s9806_s30, %s10357_s0 }
  0x17   :  { %p9812_p10 = pnand %p9810_p9, %p9807_p8 }
  0x19   :  { %9815 = shalt.err (!%p9812_p10)
}
  0x1a   :  { %s9816_s8 = scalar_lea.vmem %s9915_s15, 256  ;;  %p9821_p12 = scmp.lt.s32.totalorder %s9915_s15, %s9915_s15 }
  0x1b   :  { %p9817_p11 = scmp.ne.s32.totalorder %s9915_s15, %s9816_s8  ;;  %p9822_p13 = scmp.lt.s32.totalorder %s9816_s8, %s9816_s8 }
  0x1d   :  { %p9823_p0 = por %p9822_p13, %p9821_p12 }
  0x1f   :  { %p9824_p1 = pnand %p9823_p0, %p9817_p11 }
  0x21   :  { %9827 = shalt.err (!%p9824_p1)
}
  0x22   :  { %22 = dma.hbm_to_vmem [thread:$0]  %s10357_s0, 256, %s9915_s15, [#allocation3], %s9880_s24, %s9880_s24, %s9881_s25  }
  0x23   :  { %s9882_s10 = smov [#allocation7]   ;;  %s9828_s14 = scalar_lea.hbm %s10359_s2, 384 }
  0x24   :  { %s40_s11 = sshll.u32 %s9882_s10, 4  ;;  %p9829_p2 = scmp.ne.s32.totalorder %s10359_s2, %s9828_s14  ;;  %s41_s11 = int_to_ptr.vmem [resolvable:$true] %s40_s11 }
  0x25   :  { %p9832_p3 = scmp.lt.u32.totalorder %s9828_s14, %s10359_s2 }
  0x27   :  { %p9834_p4 = pnand %p9832_p3, %p9829_p2 }
  0x29   :  { %9837 = shalt.err (!%p9834_p4)
}
  0x2a   :  { %s9838_s20 = scalar_lea.vmem %s41_s11, 384  ;;  %p9843_p6 = scmp.lt.s32.totalorder %s41_s11, %s41_s11 }
  0x2b   :  { %p9839_p5 = scmp.ne.s32.totalorder %s41_s11, %s9838_s20  ;;  %p9844_p7 = scmp.lt.s32.totalorder %s9838_s20, %s9838_s20 }
  0x2d   :  { %p9845_p8 = por %p9844_p7, %p9843_p6 }
  0x2f   :  { %p9846_p9 = pnand %p9845_p8, %p9839_p5 }
  0x31   :  { %9849 = shalt.err (!%p9846_p9)
}
  0x32   :  { %46 = dma.hbm_to_vmem [thread:$0]  %s10359_s2, 384, %s41_s11, [#allocation6], %s9880_s24, %s9880_s24, %s9881_s25  }
  0x33   :  { %9872 = dma.done.wait [#allocation3], 256  }
  0x34   :  { %9873 = vsyncadd [#allocation3], 4294967040 }
  0x35   :  { %9874 = dma.done.wait [#allocation6], 2944  }
  0x36   :  { %9875 = vsyncadd [#allocation6], 4294964352  ;;  %vm76_vm0 = vcmask 261120   ;;  %v68_v0 = vld [vmem:[#allocation5] sm:$0xff]  ;;  %v69_v1 = vld [vmem:[#allocation5 + $0x8] sm:$0xff]  ;;  %vm617_vm1 = vcmask 64512  }
  0x37   :  { %v70_v2 = vld [vmem:[#allocation5 + $0x10] sm:$0xff]  ;;  %v84_v3 = vand.u32 4294901760, %v68_v0  ;;  %v87_v4 = vand.u32 4294901760, %v69_v1  ;;  %v71_v5 = vld [vmem:[#allocation5 + $0x18] sm:$0xff]  ;;  %v8065_v46 = vld [vmem:[#allocation7] ss:$0 sm:$0xff] }
  0x38   :  { %v90_v6 = vand.u32 4294901760, %v70_v2  ;;  %v56_v7 = vld [vmem:[#allocation2] sm:$0xff]  ;;  %v57_v8 = vld [vmem:[#allocation2 + $0x8] sm:$0xff]  ;;  %v93_v9 = vand.u32 4294901760, %v71_v5  ;;  %s9883_s2 = smov 88   ;;  %s9884_s21 = smov 96  }
  0x39   :  { %v78_v10 = vsel %vm76_vm0, %v56_v7, 0  ;;  %v81_v11 = vsel %vm76_vm0, %v57_v8, 0  ;;  %v9969_v12 = vpack.c.bf16 %v87_v4, %v84_v3  ;;  %v174_v15 = vsub.f32 %v68_v0, %v84_v3  ;;  %s9885_s22 = smov 120   ;;  %s9886_s23 = smov 80  }
  0x3a   :  { %v9971_v13 = vand.u32 4294901760, %v78_v10  ;;  %v9973_v14 = vand.u32 4294901760, %v81_v11  ;;  %v9975_v16 = vpack.c.bf16 %v93_v9, %v90_v6  ;;  %v181_v17 = vsub.f32 %v69_v1, %v87_v4  ;;  %s9887_s26 = smov 112   ;;  %s9888_s27 = smov 64  }
  0x3b   :  { %v188_v18 = vsub.f32 %v70_v2, %v90_v6  ;;  %v195_v19 = vsub.f32 %v71_v5, %v93_v9  ;;  %9172 = vmatprep.subr.bf16.mxu0 %v9969_v12  ;;  %v175_v22 = vand.u32 4294901760, %v174_v15  ;;  %vm1128_vm2 = vcmask 130048   ;;  %s9889_s28 = smov 56   ;;  %s9890_s29 = smov 72  }
  0x3c   :  { %v153_v20 = vsub.f32 %v78_v10, %v9971_v13  ;;  %v163_v21 = vsub.f32 %v81_v11, %v9973_v14  ;;  %9174 = vmatpush3.bf16.msra.mxu0 %v9969_v12  ;;  %v182_v23 = vand.u32 4294901760, %v181_v17  ;;  %v9187_v42 = vpack.c.bf16 %v181_v17, %v174_v15  ;;  %s9891_s30 = smov 104   ;;  %s9892_s4 = smov 48  }
  0x3d   :  { %v189_v24 = vand.u32 4294901760, %v188_v18  ;;  %v196_v25 = vand.u32 4294901760, %v195_v19  ;;  %9176 = vmatprep.subr.bf16.mxu0 %v9975_v16  ;;  %v176_v28 = vsub.f32 %v174_v15, %v175_v22  ;;  %v9191_v43 = vpack.c.bf16 %v195_v19, %v188_v18  ;;  %s9893_s5 = smov 40   ;;  %s9894_s6 = smov [#allocation8]  }
  0x3e   :  { %v154_v26 = vand.u32 4294901760, %v153_v20  ;;  %v164_v27 = vand.u32 4294901760, %v163_v21  ;;  %v183_v29 = vsub.f32 %v181_v17, %v182_v23  ;;  %v9203_v44 = vpack.c.bf16 %v182_v23, %v175_v22  ;;  %s8052_s7 = sshll.u32 %s9894_s6, 4  ;;  %s8053_s7 = int_to_ptr.vmem [resolvable:$true] %s8052_s7 }
  0x3f   :  { %v190_v30 = vsub.f32 %v188_v18, %v189_v24  ;;  %v197_v31 = vsub.f32 %v195_v19, %v196_v25  ;;  %v177_v34 = vand.u32 4294901760, %v176_v28  ;;  %v9207_v45 = vpack.c.bf16 %v196_v25, %v189_v24  ;;  %s9850_s8 = scalar_lea.vmem %s8053_s7, 256  ;;  %p9855_p11 = scmp.lt.s32.totalorder %s8053_s7, %s8053_s7 }
  0x40   :  { %v155_v32 = vsub.f32 %v153_v20, %v154_v26  ;;  %v165_v33 = vsub.f32 %v163_v21, %v164_v27  ;;  %9178 = vmatpush3.bf16.msra.mxu0 %v9975_v16  ;;  %v184_v35 = vand.u32 4294901760, %v183_v29  ;;  %vm7418_vm3 = vcmask 523264   ;;  %p9851_p10 = scmp.ne.s32.totalorder %s8053_s7, %s9850_s8  ;;  %p9856_p12 = scmp.lt.s32.totalorder %s9850_s8, %s9850_s8 }
  0x41   :  { %v191_v36 = vand.u32 4294901760, %v190_v30  ;;  %v198_v37 = vand.u32 4294901760, %v197_v31 }
  0x42   :  { %v156_v38 = vand.u32 4294901760, %v155_v32  ;;  %v166_v39 = vand.u32 4294901760, %v165_v33  ;;  %v9179_v40 = vpack.c.bf16 %v184_v35, %v177_v34  ;;  %p9857_p13 = por %p9856_p12, %p9855_p11 }
  0x43   :  { %v9183_v41 = vpack.c.bf16 %v198_v37, %v191_v36 }
  0x44   :  { %8477 = vmatprep.mubr.f32.mxu0 %v156_v38  ;;  %9180 = vmatprep.subr.bf16.mxu0 %v9179_v40  ;;  %p9858_p0 = pnand %p9857_p13, %p9851_p10 }
  0x45   :  { %8478 = vmatmul.mubr.f32.vlgmr.msra.gmra.mrb[0].mxu0 %v166_v39 }
  0x46   :  { %9182 = vmatpush3.bf16.msra.mxu0 %v9179_v40  ;;  %8488 = vmatprep.mubr.f32.mxu0 %v9971_v13 }
  0x47   :  { %9184 = vmatprep.subr.bf16.mxu0 %v9183_v41 }
  0x4a   :  { %9186 = vmatpush3.bf16.msra.mxu0 %v9183_v41 }
  0x4b   :  { %9188 = vmatprep.subr.bf16.mxu0 %v9187_v42 }
  0x4d   :  { %8489 = vmatmul.mubr.f32.vlgmr.msra.gmra.mrb[0].mxu0 %v9973_v14 }
  0x4e   :  { %9190 = vmatpush3.bf16.msra.mxu0 %v9187_v42  ;;  %8499 = vmatprep.mubr.f32.mxu0 %v153_v20 }
  0x4f   :  { %9192 = vmatprep.subr.bf16.mxu0 %v9191_v43 }
  0x52   :  { %9194 = vmatpush3.bf16.msra.mxu0 %v9191_v43 }
  0x53   :  { %9196 = vmatprep.subr.bf16.mxu0 %v9969_v12 }
  0x55   :  { %8500 = vmatmul.mubr.f32.vlgmr.msra.gmra.mrb[0].mxu0 %v163_v21 }
  0x56   :  { %9198 = vmatpush3.bf16.msra.mxu0 %v9969_v12  ;;  %8510 = vmatprep.mubr.f32.mxu0 %v154_v26 }
  0x57   :  { %9200 = vmatprep.subr.bf16.mxu0 %v9975_v16 }
  0x5a   :  { %9202 = vmatpush3.bf16.msra.mxu0 %v9975_v16 }
  0x5b   :  { %9204 = vmatprep.subr.bf16.mxu0 %v9203_v44 }
  0x5d   :  { %8511 = vmatmul.mubr.f32.vlgmr.msra.gmra.mrb[0].mxu0 %v164_v27 }
  0x5e   :  { %9206 = vmatpush3.bf16.msra.mxu0 %v9203_v44  ;;  %8521 = vmatprep.mubr.f32.mxu0 %v9971_v13 }
  0x5f   :  { %9208 = vmatprep.subr.bf16.mxu0 %v9207_v45 }
  0x62   :  { %9210 = vmatpush3.bf16.msra.mxu0 %v9207_v45 }
  0x63   :  { %9212 = vmatprep.subr.bf16.mxu0 %v9969_v12 }
  0x65   :  { %8522 = vmatmul.mubr.f32.vlgmr.msra.gmra.mrb[0].mxu0 %v9973_v14 }
  0x66   :  { %9214 = vmatpush3.bf16.msra.mxu0 %v9969_v12  ;;  %8532 = vmatprep.mubr.f32.mxu0 %v9971_v13 }
  0x67   :  { %9216 = vmatprep.subr.bf16.mxu0 %v9975_v16 }
  0x6a   :  { %9218 = vmatpush3.bf16.msra.mxu0 %v9975_v16 }
  0x6d   :  { %8533 = vmatmul.mubr.f32.vlgmr.msra.gmra.mrb[0].mxu0 %v9973_v14 }
 0x140   :  { %v8534_v47 = vpop.f32.mrb[0].mxu0 }
 0x141   :  { %v9997_v48 = vadd.f32 %v8534_v47, %v8065_v46  ;;  %v601_v49 = vpop.f32.mrb[1].mxu0 }
 0x142   :  { %v9999_v50 = vadd.f32 %v8065_v46, %v601_v49 }
 0x143   :  { %1672 = vrot.lane.b32.xlu1 %v9997_v48, %s9883_s2  ;;  %v620_v57 = vsel %vm617_vm1, %v9997_v48, 0 }
 0x144   :  { %613 = vrot.lane.b32.xlu0 %v9999_v50, %s9884_s21  ;;  %v618_v51 = vsel %vm617_vm1, %v9999_v50, 0  ;;  %v10014_v59 = vand.u32 4294901760, %v620_v57 }
 0x145   :  { %v10005_v52 = vand.u32 4294901760, %v618_v51 }
 0x146   :  { %v704_v0 = vsub.f32 %v620_v57, %v10014_v59 }
 0x147   :  { %1670 = vrot.lane.b32.xlu1 %v9999_v50, %s9883_s2  ;;  %v694_v53 = vsub.f32 %v618_v51, %v10005_v52  ;;  %v10029_v51 = vld [vmem:[#allocation7 + $0x10] sm:$0xff] }
 0x148   :  { %615 = vrot.lane.b32.xlu0 %v9997_v48, %s9884_s21  ;;  %v705_v6 = vand.u32 4294901760, %v704_v0 }
 0x149   :  { %v695_v54 = vand.u32 4294901760, %v694_v53 }
 0x14a   :  { %v706_v10 = vsub.f32 %v704_v0, %v705_v6 }
 0x14b   :  { %1668 = vrot.lane.b32.xlu1 %v9997_v48, %s9885_s22  ;;  %v696_v55 = vsub.f32 %v694_v53, %v695_v54 }
 0x14c   :  { %1666 = vrot.lane.b32.xlu0 %v9999_v50, %s9885_s22  ;;  %v707_v13 = vand.u32 4294901760, %v706_v10 }
 0x14d   :  { %v697_v56 = vand.u32 4294901760, %v696_v55 }
 0x14f   :  { %8539 = vmatprep.mubr.f32.mxu1 %v697_v56 }
 0x1b5   :  { %v1673_v16 = vpop.permute.xlu1 %1672 }
 0x1b6   :  { %v614_v58 = vpop.permute.xlu0 %613  ;;  %v1680_v21 = vsel %vm617_vm1, %v1673_v16, 0 }
 0x1b7   :  { %v622_v60 = vsel %vm617_vm1, %v614_v58, 0  ;;  %v1686_v24 = vand.u32 4294901760, %v1680_v21 }
 0x1b8   :  { %v627_v61 = vand.u32 4294901760, %v622_v60 }
 0x1b9   :  { %v1671_v17 = vpop.permute.xlu1 %1670  ;;  %v1778_v28 = vsub.f32 %v1680_v21, %v1686_v24 }
 0x1ba   :  { %v715_v62 = vsub.f32 %v622_v60, %v627_v61  ;;  %v616_v63 = vpop.permute.xlu0 %615  ;;  %v1678_v19 = vsel %vm617_vm1, %v1671_v17, 0 }
 0x1bb   :  { %v624_v1 = vsel %vm617_vm1, %v616_v63, 0  ;;  %v1683_v22 = vand.u32 4294901760, %v1678_v19  ;;  %v1779_v32 = vand.u32 4294901760, %v1778_v28 }
 0x1bc   :  { %v716_v2 = vand.u32 4294901760, %v715_v62  ;;  %v630_v3 = vand.u32 4294901760, %v624_v1 }
 0x1bd   :  { %v1771_v26 = vsub.f32 %v1678_v19, %v1683_v22  ;;  %v1669_v27 = vpop.permute.xlu1 %1668  ;;  %v9267_v35 = vpack.c.bf16 %v1686_v24, %v1683_v22  ;;  %v1780_v37 = vsub.f32 %v1778_v28, %v1779_v32 }
 0x1be   :  { %v9219_v4 = vpack.c.bf16 %v630_v3, %v627_v61  ;;  %v722_v5 = vsub.f32 %v624_v1, %v630_v3  ;;  %v717_v7 = vsub.f32 %v715_v62, %v716_v2  ;;  %v1667_v20 = vpop.permute.xlu0 %1666  ;;  %v1676_v29 = vsel %vm617_vm1, %v1669_v27, 0 }
 0x1bf   :  { %v1674_v23 = vsel %vm617_vm1, %v1667_v20, 0  ;;  %v1772_v31 = vand.u32 4294901760, %v1771_v26  ;;  %v1759_v33 = vand.u32 4294901760, %v1676_v29  ;;  %v1781_v42 = vand.u32 4294901760, %v1780_v37 }
 0x1c0   :  { %v723_v8 = vand.u32 4294901760, %v722_v5  ;;  %9220 = vmatprep.subr.bf16.mxu1 %v9219_v4  ;;  %v718_v11 = vand.u32 4294901760, %v717_v7  ;;  %v9227_v15 = vpack.c.bf16 %v722_v5, %v715_v62  ;;  %v1749_v25 = vand.u32 4294901760, %v1674_v23 }
 0x1c1   :  { %9222 = vmatpush3.bf16.xpose.msra.mxu1 %v9219_v4  ;;  %v1773_v36 = vsub.f32 %v1771_v26, %v1772_v31  ;;  %v1760_v38 = vsub.f32 %v1676_v29, %v1759_v33  ;;  %v9275_v47 = vpack.c.bf16 %v1778_v28, %v1771_v26  ;;  %v9283_v49 = vpack.c.bf16 %v1779_v32, %v1772_v31 }
 0x1c2   :  { %v724_v9 = vsub.f32 %v722_v5, %v723_v8  ;;  %v9235_v18 = vpack.c.bf16 %v723_v8, %v716_v2  ;;  %v1750_v30 = vsub.f32 %v1674_v23, %v1749_v25 }
 0x1c3   :  { %v1774_v40 = vand.u32 4294901760, %v1773_v36  ;;  %v1761_v41 = vand.u32 4294901760, %v1760_v38 }
 0x1c4   :  { %v725_v12 = vand.u32 4294901760, %v724_v9  ;;  %v1751_v34 = vand.u32 4294901760, %v1750_v30 }
 0x1c5   :  { %v9271_v44 = vpack.c.bf16 %v1781_v42, %v1774_v40  ;;  %v1762_v45 = vsub.f32 %v1760_v38, %v1761_v41 }
 0x1c6   :  { %v9223_v14 = vpack.c.bf16 %v725_v12, %v718_v11  ;;  %v1752_v39 = vsub.f32 %v1750_v30, %v1751_v34 }
 0x1c7   :  { %v1763_v46 = vand.u32 4294901760, %v1762_v45 }
 0x1c8   :  { %8540 = vmatmul.mubr.f32.vlgmr.msra.gmra.mrb[0].mxu1 %v707_v13  ;;  %9224 = vmatprep.subr.bf16.mxu1 %v9223_v14  ;;  %v1753_v43 = vand.u32 4294901760, %v1752_v39 }
 0x1c9   :  { %9226 = vmatpush3.bf16.xpose.msra.mxu1 %v9223_v14  ;;  %8546 = vmatprep.mubr.f32.mxu1 %v10005_v52 }
 0x1ca   :  { %9228 = vmatprep.subr.bf16.mxu1 %v9227_v15 }
 0x1d0   :  { %8547 = vmatmul.mubr.f32.vlgmr.msra.gmra.mrb[0].mxu1 %v10014_v59 }
 0x1d1   :  { %9230 = vmatpush3.bf16.xpose.msra.mxu1 %v9227_v15  ;;  %8553 = vmatprep.mubr.f32.mxu1 %v694_v53 }
 0x1d2   :  { %9232 = vmatprep.subr.bf16.mxu1 %v9219_v4 }
 0x1d8   :  { %8554 = vmatmul.mubr.f32.vlgmr.msra.gmra.mrb[0].mxu1 %v704_v0 }
 0x1d9   :  { %9234 = vmatpush3.bf16.xpose.msra.mxu1 %v9219_v4  ;;  %8560 = vmatprep.mubr.f32.mxu1 %v695_v54 }
 0x1da   :  { %9236 = vmatprep.subr.bf16.mxu1 %v9235_v18 }
 0x1e0   :  { %8561 = vmatmul.mubr.f32.vlgmr.msra.gmra.mrb[0].mxu1 %v705_v6 }
 0x1e1   :  { %9238 = vmatpush3.bf16.xpose.msra.mxu1 %v9235_v18  ;;  %8567 = vmatprep.mubr.f32.mxu1 %v10005_v52 }
 0x1e2   :  { %9240 = vmatprep.subr.bf16.mxu1 %v9219_v4 }
 0x1e8   :  { %8568 = vmatmul.mubr.f32.vlgmr.msra.gmra.mrb[0].mxu1 %v10014_v59 }
 0x1e9   :  { %9242 = vmatpush3.bf16.xpose.msra.mxu1 %v9219_v4  ;;  %8574 = vmatprep.mubr.f32.mxu1 %v10005_v52  ;;  %v10031_v52 = vld [vmem:[#allocation7 + $0x8] sm:$0xff] }
 0x1ea   :  { %9268 = vmatprep.subr.bf16.mxu1 %v9267_v35 }
 0x1f0   :  { %8575 = vmatmul.mubr.f32.vlgmr.msra.gmra.mrb[0].mxu1 %v10014_v59 }
 0x1f1   :  { %9270 = vmatpush3.bf16.xpose.msra.mxu1 %v9267_v35  ;;  %8623 = vmatprep.mubr.f32.mxu1 %v1753_v43 }
 0x1f2   :  { %9272 = vmatprep.subr.bf16.mxu1 %v9271_v44 }
 0x1f8   :  { %8624 = vmatmul.mubr.f32.vlgmr.msra.gmra.mrb[2].mxu1 %v1763_v46 }
 0x1f9   :  { %9274 = vmatpush3.bf16.xpose.msra.mxu1 %v9271_v44  ;;  %8630 = vmatprep.mubr.f32.mxu1 %v1749_v25 }
 0x1fa   :  { %9276 = vmatprep.subr.bf16.mxu1 %v9275_v47 }
 0x200   :  { %8631 = vmatmul.mubr.f32.vlgmr.msra.gmra.mrb[2].mxu1 %v1759_v33 }
 0x201   :  { %9278 = vmatpush3.bf16.xpose.msra.mxu1 %v9275_v47  ;;  %8637 = vmatprep.mubr.f32.mxu1 %v1750_v30 }
 0x202   :  { %9280 = vmatprep.subr.bf16.mxu1 %v9267_v35 }
 0x208   :  { %8638 = vmatmul.mubr.f32.vlgmr.msra.gmra.mrb[2].mxu1 %v1760_v38 }
 0x209   :  { %9282 = vmatpush3.bf16.xpose.msra.mxu1 %v9267_v35  ;;  %8644 = vmatprep.mubr.f32.mxu1 %v1751_v34 }
 0x20a   :  { %9284 = vmatprep.subr.bf16.mxu1 %v9283_v49 }
 0x210   :  { %8645 = vmatmul.mubr.f32.vlgmr.msra.gmra.mrb[2].mxu1 %v1761_v41 }
 0x211   :  { %9286 = vmatpush3.bf16.xpose.msra.mxu1 %v9283_v49  ;;  %8651 = vmatprep.mubr.f32.mxu1 %v1749_v25 }
 0x212   :  { %9288 = vmatprep.subr.bf16.mxu1 %v9267_v35 }
 0x218   :  { %8652 = vmatmul.mubr.f32.vlgmr.msra.gmra.mrb[2].mxu1 %v1759_v33 }
 0x219   :  { %9290 = vmatpush3.bf16.xpose.msra.mxu1 %v9267_v35  ;;  %8658 = vmatprep.mubr.f32.mxu1 %v1749_v25 }
 0x220   :  { %8659 = vmatmul.mubr.f32.vlgmr.msra.gmra.mrb[2].mxu1 %v1759_v33 }
 0x2c3   :  { %v8576_v53 = vpop.f32.mrb[0].mxu1 }
 0x2c4   :  { %v9557_v54 = vadd.f32 %v8576_v53, %v10029_v51  ;;  %v1118_v55 = vpop.f32.mrb[1].mxu1 }
 0x2c5   :  { %v9558_v56 = vadd.f32 %v1118_v55, %v10031_v52 }
 0x2c6   :  { %v1132_v57 = vsel %vm1128_vm2, %v9557_v54, -inf }
 0x2c7   :  { %1133 = vmax.xlane.f32.xlu1 %v1132_v57  ;;  %v1129_v58 = vsel %vm1128_vm2, %v9558_v56, -inf }
 0x2c8   :  { %1130 = vmax.xlane.f32.xlu0 %v1129_v58 }
 0x2d8   :  { %3715 = vrot.lane.b32.xlu1 %v9999_v50, %s9886_s23 }
 0x2dc   :  { %3711 = vrot.lane.b32.xlu1 %v9999_v50, %s9887_s26 }
 0x2e0   :  { %3713 = vrot.lane.b32.xlu1 %v9997_v48, %s9887_s26 }
 0x2f3   :  { %v8660_v59 = vpop.f32.mrb[2].mxu1 }
 0x2f4   :  { %v9559_v60 = vadd.f32 %v8660_v59, %v10029_v51  ;;  %v2174_v61 = vpop.f32.mrb[3].mxu1 }
 0x2f5   :  { %v9560_v62 = vadd.f32 %v2174_v61, %v10031_v52 }
 0x2f6   :  { %v2187_v63 = vsel %vm1128_vm2, %v9559_v60, -inf }
 0x2f7   :  { %2188 = vmax.xlane.f32.xlu0 %v2187_v63  ;;  %v2184_v0 = vsel %vm1128_vm2, %v9560_v62, -inf }
 0x2fb   :  { %2185 = vmax.xlane.f32.xlu0 %v2184_v0 }
 0x311   :  { %3717 = vrot.lane.b32.xlu0 %v9997_v48, %s9886_s23 }
 0x354   :  { %v1134_v1 = vpop.xlane.xlu1 %1133 }
 0x355   :  { %v1136_v2 = vsub.f32 %v9557_v54, %v1134_v1  ;;  %v1131_v3 = vpop.xlane.xlu0 %1130 }
 0x356   :  { %v1135_v4 = vsub.f32 %v9558_v56, %v1131_v3 }
 0x357   :  { %v1139_v5 = vmul.f32 1.442695, %v1136_v2 }
 0x358   :  { %v1137_v6 = vmul.f32 1.442695, %v1135_v4  ;;  %v3716_v7 = vpop.permute.xlu1 %3715 }
 0x359   :  { %9742 = vpow2.f32 %v1139_v5  ;;  %v3723_v20 = vsel %vm617_vm1, %v3716_v7, 0 }
 0x35a   :  { %9744 = vpow2.f32 %v1137_v6  ;;  %v3728_v24 = vand.u32 4294901760, %v3723_v20 }
 0x35c   :  { %v3712_v8 = vpop.permute.xlu1 %3711  ;;  %v3816_v29 = vsub.f32 %v3723_v20, %v3728_v24 }
 0x35d   :  { %v3719_v9 = vsel %vm617_vm1, %v3712_v8, 0 }
 0x35e   :  { %v10046_v10 = vand.u32 4294901760, %v3719_v9  ;;  %v3817_v34 = vand.u32 4294901760, %v3816_v29 }
 0x360   :  { %v10049_v11 = vsub.f32 %v3719_v9, %v10046_v10  ;;  %v3714_v19 = vpop.permute.xlu1 %3713  ;;  %v3818_v39 = vsub.f32 %v3816_v29, %v3817_v34 }
 0x361   :  { %v3721_v22 = vsel %vm617_vm1, %v3714_v19, 0 }
 0x362   :  { %v3796_v12 = vand.u32 4294901760, %v10049_v11  ;;  %v3804_v25 = vand.u32 4294901760, %v3721_v22  ;;  %v3819_v44 = vand.u32 4294901760, %v3818_v39 }
 0x363   :  { %v10052_v13 = vpop.eup %9742 }
 0x364   :  { %v10054_v14 = vpop.eup %9744  ;;  %v1144_v15 = vsel %vm1128_vm2, %v10052_v13, 0.0  ;;  %v3797_v16 = vsub.f32 %v10049_v11, %v3796_v12  ;;  %v3805_v31 = vsub.f32 %v3721_v22, %v3804_v25 }
 0x365   :  { %1145 = vadd.xlane.f32.xlu1 %v1144_v15  ;;  %v1141_v17 = vsel %vm1128_vm2, %v10054_v14, 0.0 }
 0x366   :  { %1142 = vadd.xlane.f32.xlu0 %v1141_v17  ;;  %v3798_v18 = vand.u32 4294901760, %v3797_v16  ;;  %v3806_v36 = vand.u32 4294901760, %v3805_v31 }
 0x368   :  { %8767 = vmatprep.mubr.f32.mxu1 %v3798_v18  ;;  %v3807_v41 = vsub.f32 %v3805_v31, %v3806_v36 }
 0x36a   :  { %v3808_v47 = vand.u32 4294901760, %v3807_v41 }
 0x376   :  { %1153 = vrot.lane.b32.xlu1 %v9997_v48, %s9888_s27 }
 0x37c   :  { %1151 = vrot.lane.b32.xlu0 %v9999_v50, %s9888_s27 }
 0x384   :  { %v2189_v21 = vpop.xlane.xlu0 %2188 }
 0x385   :  { %v2191_v23 = vsub.f32 %v9559_v60, %v2189_v21 }
 0x387   :  { %v2194_v26 = vmul.f32 1.442695, %v2191_v23 }
 0x388   :  { %v2186_v27 = vpop.xlane.xlu0 %2185 }
 0x389   :  { %v2190_v28 = vsub.f32 %v9560_v62, %v2186_v27  ;;  %9746 = vpow2.f32 %v2194_v26 }
 0x38b   :  { %v2192_v30 = vmul.f32 1.442695, %v2190_v28 }
 0x38c   :  { %v3718_v32 = vpop.permute.xlu0 %3717 }
 0x38d   :  { %9748 = vpow2.f32 %v2192_v30  ;;  %v3725_v33 = vsel %vm617_vm1, %v3718_v32, 0 }
 0x38e   :  { %v3731_v35 = vand.u32 4294901760, %v3725_v33 }
 0x390   :  { %v9315_v37 = vpack.c.bf16 %v3731_v35, %v3728_v24  ;;  %v3823_v38 = vsub.f32 %v3725_v33, %v3731_v35 }
 0x392   :  { %v3824_v40 = vand.u32 4294901760, %v3823_v38  ;;  %9316 = vmatprep.subr.bf16.mxu1 %v9315_v37  ;;  %v9323_v55 = vpack.c.bf16 %v3823_v38, %v3816_v29 }
 0x393   :  { %9318 = vmatpush3.bf16.xpose.msra.mxu1 %v9315_v37  ;;  %v10068_v43 = vpop.eup %9746 }
 0x394   :  { %v3825_v42 = vsub.f32 %v3823_v38, %v3824_v40  ;;  %v2199_v53 = vsel %vm1128_vm2, %v10068_v43, 0.0  ;;  %v9331_v56 = vpack.c.bf16 %v3824_v40, %v3817_v34 }
 0x396   :  { %v3826_v45 = vand.u32 4294901760, %v3825_v42 }
 0x397   :  { %v10070_v46 = vpop.eup %9748 }
 0x398   :  { %v9319_v49 = vpack.c.bf16 %v3826_v45, %v3819_v44  ;;  %v2196_v54 = vsel %vm1128_vm2, %v10070_v46, 0.0 }
 0x39a   :  { %2200 = vadd.xlane.f32.xlu1 %v2199_v53  ;;  %8768 = vmatmul.mubr.f32.vlgmr.msra.gmra.mrb[4].mxu1 %v3808_v47 }
 0x39b   :  { %9320 = vmatprep.subr.bf16.mxu1 %v9319_v49  ;;  %2197 = vadd.xlane.f32.xlu0 %v2196_v54 }
 0x39c   :  { %9322 = vmatpush3.bf16.xpose.msra.mxu1 %v9319_v49  ;;  %8774 = vmatprep.mubr.f32.mxu1 %v10046_v10 }
 0x39d   :  { %9324 = vmatprep.subr.bf16.mxu1 %v9323_v55 }
 0x3a3   :  { %8775 = vmatmul.mubr.f32.vlgmr.msra.gmra.mrb[4].mxu1 %v3804_v25 }
 0x3a4   :  { %9326 = vmatpush3.bf16.xpose.msra.mxu1 %v9323_v55  ;;  %8781 = vmatprep.mubr.f32.mxu1 %v10049_v11 }
 0x3a5   :  { %9328 = vmatprep.subr.bf16.mxu1 %v9315_v37 }
 0x3ab   :  { %8782 = vmatmul.mubr.f32.vlgmr.msra.gmra.mrb[4].mxu1 %v3805_v31  ;;  %2208 = vrot.lane.b32.xlu1 %v9997_v48, %s9889_s28 }
 0x3ac   :  { %9330 = vmatpush3.bf16.xpose.msra.mxu1 %v9315_v37  ;;  %8788 = vmatprep.mubr.f32.mxu1 %v3796_v12 }
 0x3ad   :  { %9332 = vmatprep.subr.bf16.mxu1 %v9331_v56 }
 0x3af   :  { %5269 = vrot.lane.b32.xlu1 %v9997_v48, %s9890_s29 }
 0x3b1   :  { %2206 = vrot.lane.b32.xlu0 %v9999_v50, %s9889_s28 }
 0x3b3   :  { %8789 = vmatmul.mubr.f32.vlgmr.msra.gmra.mrb[4].mxu1 %v3806_v36  ;;  %5265 = vrot.lane.b32.xlu1 %v9997_v48, %s9891_s30 }
 0x3b4   :  { %9334 = vmatpush3.bf16.xpose.msra.mxu1 %v9331_v56  ;;  %8795 = vmatprep.mubr.f32.mxu1 %v10046_v10 }
 0x3b5   :  { %9336 = vmatprep.subr.bf16.mxu1 %v9315_v37  ;;  %5267 = vrot.lane.b32.xlu0 %v9999_v50, %s9890_s29 }
 0x3b9   :  { %5263 = vrot.lane.b32.xlu0 %v9999_v50, %s9891_s30 }
 0x3bb   :  { %8796 = vmatmul.mubr.f32.vlgmr.msra.gmra.mrb[4].mxu1 %v3804_v25 }
 0x3bc   :  { %9338 = vmatpush3.bf16.xpose.msra.mxu1 %v9315_v37  ;;  %8802 = vmatprep.mubr.f32.mxu1 %v10046_v10 }
 0x3c3   :  { %8803 = vmatmul.mubr.f32.vlgmr.msra.gmra.mrb[4].mxu1 %v3804_v25 }
 0x3f2   :  { %v1146_v57 = vpop.xlane.xlu1 %1145 }
 0x3f3   :  { %9750 = vrcp.f32 %v1146_v57  ;;  %v1143_v58 = vpop.xlane.xlu0 %1142 }
 0x3f4   :  { %9752 = vrcp.f32 %v1143_v58 }
 0x3f6   :  { %v1154_v59 = vpop.permute.xlu1 %1153 }
 0x3f7   :  { %v1167_v60 = vand.u32 4294901760, %v1154_v59  ;;  %v1152_v61 = vpop.permute.xlu0 %1151 }
 0x3f8   :  { %v1164_v62 = vand.u32 4294901760, %v1152_v61 }
 0x3f9   :  { %v1259_v63 = vsub.f32 %v1154_v59, %v1167_v60 }
 0x3fa   :  { %v9243_v0 = vpack.c.bf16 %v1167_v60, %v1164_v62  ;;  %v1252_v1 = vsub.f32 %v1152_v61, %v1164_v62 }
 0x3fb   :  { %v1260_v2 = vand.u32 4294901760, %v1259_v63 }
 0x3fc   :  { %v1253_v3 = vand.u32 4294901760, %v1252_v1  ;;  %9244 = vmatprep.subr.bf16.mxu0 %v9243_v0  ;;  %v9251_v25 = vpack.c.bf16 %v1259_v63, %v1252_v1 }
 0x3fd   :  { %v9751_v4 = vpop.eup %9750  ;;  %v1261_v5 = vsub.f32 %v1259_v63, %v1260_v2  ;;  %9246 = vmatpush3.bf16.msra.mxu0 %v9243_v0 }
 0x3fe   :  { %v9753_v6 = vpop.eup %9752  ;;  %v1150_v7 = vmul.f32 %v9751_v4, %v10052_v13  ;;  %v1254_v8 = vsub.f32 %v1252_v1, %v1253_v3  ;;  %v9259_v26 = vpack.c.bf16 %v1260_v2, %v1253_v3 }
 0x3ff   :  { %v1148_v9 = vmul.f32 %v9753_v6, %v10054_v14  ;;  %v1262_v10 = vand.u32 4294901760, %v1261_v5 }
 0x400   :  { %v1255_v11 = vand.u32 4294901760, %v1254_v8  ;;  %v1161_v12 = vsel %vm1128_vm2, %v1150_v7, 0 }
 0x401   :  { %v1158_v15 = vsel %vm1128_vm2, %v1148_v9, 0  ;;  %v10092_v16 = vand.u32 4294901760, %v1161_v12 }
 0x402   :  { %v9247_v17 = vpack.c.bf16 %v1262_v10, %v1255_v11  ;;  %v1230_v18 = vand.u32 4294901760, %v1158_v15 }
 0x403   :  { %v1241_v19 = vsub.f32 %v1161_v12, %v10092_v16 }
 0x404   :  { %9248 = vmatprep.subr.bf16.mxu0 %v9247_v17  ;;  %v1231_v20 = vsub.f32 %v1158_v15, %v1230_v18 }
 0x405   :  { %v1242_v21 = vand.u32 4294901760, %v1241_v19 }
 0x406   :  { %v1232_v22 = vand.u32 4294901760, %v1231_v20 }
 0x407   :  { %v1243_v13 = vsub.f32 %v1241_v19, %v1242_v21 }
 0x408   :  { %v1233_v23 = vsub.f32 %v1231_v20, %v1232_v22 }
 0x409   :  { %v1244_v14 = vand.u32 4294901760, %v1243_v13 }
 0x40a   :  { %v1234_v24 = vand.u32 4294901760, %v1233_v23 }
 0x40c   :  { %8581 = vmatprep.mubr.f32.mxu0 %v1234_v24 }
 0x40d   :  { %8582 = vmatmul.mubr.f32.vlgmr.msra.gmra.mrb[2].mxu0 %v1244_v14 }
 0x40e   :  { %9250 = vmatpush3.bf16.msra.mxu0 %v9247_v17  ;;  %8588 = vmatprep.mubr.f32.mxu0 %v1230_v18 }
 0x40f   :  { %9252 = vmatprep.subr.bf16.mxu0 %v9251_v25 }
 0x415   :  { %8589 = vmatmul.mubr.f32.vlgmr.msra.gmra.mrb[2].mxu0 %v10092_v16 }
 0x416   :  { %9254 = vmatpush3.bf16.msra.mxu0 %v9251_v25  ;;  %8595 = vmatprep.mubr.f32.mxu0 %v1231_v20 }
 0x417   :  { %9256 = vmatprep.subr.bf16.mxu0 %v9243_v0 }
 0x41d   :  { %8596 = vmatmul.mubr.f32.vlgmr.msra.gmra.mrb[2].mxu0 %v1241_v19 }
 0x41e   :  { %9258 = vmatpush3.bf16.msra.mxu0 %v9243_v0  ;;  %8602 = vmatprep.mubr.f32.mxu0 %v1232_v22 }
 0x41f   :  { %9260 = vmatprep.subr.bf16.mxu0 %v9259_v26 }
 0x425   :  { %8603 = vmatmul.mubr.f32.vlgmr.msra.gmra.mrb[2].mxu0 %v1242_v21 }
 0x426   :  { %9262 = vmatpush3.bf16.msra.mxu0 %v9259_v26  ;;  %8609 = vmatprep.mubr.f32.mxu0 %v1230_v18 }
 0x427   :  { %9264 = vmatprep.subr.bf16.mxu0 %v9243_v0  ;;  %v2201_v27 = vpop.xlane.xlu1 %2200 }
 0x428   :  { %9754 = vrcp.f32 %v2201_v27  ;;  %v2198_v28 = vpop.xlane.xlu0 %2197 }
 0x429   :  { %9756 = vrcp.f32 %v2198_v28 }
 0x42b   :  { %v2209_v29 = vpop.permute.xlu1 %2208 }
 0x42c   :  { %v2222_v30 = vand.u32 4294901760, %v2209_v29  ;;  %v2207_v31 = vpop.permute.xlu0 %2206 }
 0x42d   :  { %v2219_v32 = vand.u32 4294901760, %v2207_v31  ;;  %8610 = vmatmul.mubr.f32.vlgmr.msra.gmra.mrb[2].mxu0 %v10092_v16 }
 0x42e   :  { %v10097_v33 = vsub.f32 %v2209_v29, %v2222_v30  ;;  %9266 = vmatpush3.bf16.msra.mxu0 %v9243_v0  ;;  %8616 = vmatprep.mubr.f32.mxu0 %v1230_v18 }
 0x42f   :  { %v10099_v34 = vpack.c.bf16 %v2222_v30, %v2219_v32  ;;  %v10101_v35 = vsub.f32 %v2207_v31, %v2219_v32  ;;  %v5270_v36 = vpop.permute.xlu1 %5269 }
 0x430   :  { %v2315_v37 = vand.u32 4294901760, %v10097_v33  ;;  %v5277_v38 = vsel %vm617_vm1, %v5270_v36, 0  ;;  %v5268_v39 = vpop.permute.xlu0 %5267 }
 0x431   :  { %v2308_v40 = vand.u32 4294901760, %v10101_v35  ;;  %v5283_v41 = vand.u32 4294901760, %v5277_v38  ;;  %v5275_v42 = vsel %vm617_vm1, %v5268_v39, 0  ;;  %9292 = vmatprep.subr.bf16.mxu0 %v10099_v34  ;;  %v9299_v30 = vpack.c.bf16 %v10097_v33, %v10101_v35 }
 0x432   :  { %v9755_v44 = vpop.eup %9754  ;;  %v2316_v45 = vsub.f32 %v10097_v33, %v2315_v37  ;;  %v5280_v47 = vand.u32 4294901760, %v5275_v42 }
 0x433   :  { %v9757_v49 = vpop.eup %9756  ;;  %v2205_v53 = vmul.f32 %v9755_v44, %v10068_v43  ;;  %v2309_v54 = vsub.f32 %v10101_v35, %v2308_v40  ;;  %v10115_v55 = vsub.f32 %v5277_v38, %v5283_v41  ;;  %v5266_v56 = vpop.permute.xlu1 %5265  ;;  %v9307_v32 = vpack.c.bf16 %v2315_v37, %v2308_v40 }
 0x434   :  { %v2203_v57 = vmul.f32 %v9757_v49, %v10070_v46  ;;  %v10118_v58 = vpack.c.bf16 %v5283_v41, %v5280_v47  ;;  %v10120_v59 = vsub.f32 %v5275_v42, %v5280_v47  ;;  %v5273_v60 = vsel %vm617_vm1, %v5266_v56, 0  ;;  %v5264_v61 = vpop.permute.xlu0 %5263 }
 0x435   :  { %v5376_v62 = vand.u32 4294901760, %v10115_v55  ;;  %v10124_v63 = vand.u32 4294901760, %v5273_v60  ;;  %v5271_v43 = vsel %vm617_vm1, %v5264_v61, 0  ;;  %8617 = vmatmul.mubr.f32.vlgmr.msra.gmra.mrb[2].mxu0 %v10092_v16  ;;  %v2310_v0 = vand.u32 4294901760, %v2309_v54 }
 0x436   :  { %v5369_v1 = vand.u32 4294901760, %v10120_v59  ;;  %v10129_v2 = vand.u32 4294901760, %v5271_v43  ;;  %9294 = vmatpush3.bf16.msra.mxu0 %v10099_v34  ;;  %9364 = vmatprep.subr.bf16.mxu1 %v10118_v58  ;;  %v2317_v46 = vand.u32 4294901760, %v2316_v45  ;;  %v2213_v3 = vsel %vm1128_vm2, %v2203_v57, 0 }
 0x437   :  { %v5377_v4 = vsub.f32 %v10115_v55, %v5376_v62  ;;  %v5357_v5 = vsub.f32 %v5273_v60, %v10124_v63  ;;  %9366 = vmatpush3.bf16.xpose.msra.mxu1 %v10118_v58  ;;  %v10137_v6 = vand.u32 4294901760, %v2213_v3  ;;  %v2216_v7 = vsel %vm1128_vm2, %v2205_v53, 0 }
 0x438   :  { %v5370_v8 = vsub.f32 %v10120_v59, %v5369_v1  ;;  %v5347_v9 = vsub.f32 %v5271_v43, %v10129_v2  ;;  %v9295_v10 = vpack.c.bf16 %v2317_v46, %v2310_v0  ;;  %v10142_v11 = vand.u32 4294901760, %v2216_v7 }
 0x439   :  { %v5358_v12 = vand.u32 4294901760, %v5357_v5  ;;  %v5378_v15 = vand.u32 4294901760, %v5377_v4  ;;  %v2286_v16 = vsub.f32 %v2213_v3, %v10137_v6  ;;  %v9371_v29 = vpack.c.bf16 %v10115_v55, %v10120_v59 }
 0x43a   :  { %v5348_v17 = vand.u32 4294901760, %v5347_v9  ;;  %9296 = vmatprep.subr.bf16.mxu0 %v9295_v10  ;;  %v5371_v18 = vand.u32 4294901760, %v5370_v8  ;;  %v2296_v19 = vsub.f32 %v2216_v7, %v10142_v11  ;;  %v9379_v31 = vpack.c.bf16 %v5376_v62, %v5369_v1 }
 0x43b   :  { %v5359_v20 = vsub.f32 %v5357_v5, %v5358_v12  ;;  %v2287_v21 = vand.u32 4294901760, %v2286_v16 }
 0x43c   :  { %v9367_v22 = vpack.c.bf16 %v5378_v15, %v5371_v18  ;;  %v5349_v13 = vsub.f32 %v5347_v9, %v5348_v17  ;;  %v2297_v23 = vand.u32 4294901760, %v2296_v19 }
 0x43d   :  { %v2288_v24 = vsub.f32 %v2286_v16, %v2287_v21  ;;  %v5360_v26 = vand.u32 4294901760, %v5359_v20 }
 0x43e   :  { %9368 = vmatprep.subr.bf16.mxu1 %v9367_v22  ;;  %v5350_v14 = vand.u32 4294901760, %v5349_v13  ;;  %v2298_v25 = vsub.f32 %v2296_v19, %v2297_v23 }
 0x43f   :  { %v2289_v27 = vand.u32 4294901760, %v2288_v24 }
 0x440   :  { %8881 = vmatprep.mubr.f32.mxu1 %v5350_v14  ;;  %v2299_v28 = vand.u32 4294901760, %v2298_v25 }
 0x441   :  { %8665 = vmatprep.mubr.f32.mxu0 %v2289_v27  ;;  %8882 = vmatmul.mubr.f32.vlgmr.msra.gmra.mrb[6].mxu1 %v5360_v26 }
 0x442   :  { %9370 = vmatpush3.bf16.xpose.msra.mxu1 %v9367_v22  ;;  %8666 = vmatmul.mubr.f32.vlgmr.msra.gmra.mrb[4].mxu0 %v2299_v28 }
 0x443   :  { %9298 = vmatpush3.bf16.msra.mxu0 %v9295_v10  ;;  %8888 = vmatprep.mubr.f32.mxu1 %v10129_v2 }
 0x444   :  { %9372 = vmatprep.subr.bf16.mxu1 %v9371_v29  ;;  %8672 = vmatprep.mubr.f32.mxu0 %v10137_v6 }
 0x445   :  { %9300 = vmatprep.subr.bf16.mxu0 %v9299_v30 }
 0x449   :  { %8889 = vmatmul.mubr.f32.vlgmr.msra.gmra.mrb[6].mxu1 %v10124_v63 }
 0x44a   :  { %9374 = vmatpush3.bf16.xpose.msra.mxu1 %v9371_v29  ;;  %8673 = vmatmul.mubr.f32.vlgmr.msra.gmra.mrb[4].mxu0 %v10142_v11 }
 0x44b   :  { %9302 = vmatpush3.bf16.msra.mxu0 %v9299_v30  ;;  %8895 = vmatprep.mubr.f32.mxu1 %v5347_v9 }
 0x44c   :  { %9376 = vmatprep.subr.bf16.mxu1 %v10118_v58  ;;  %8679 = vmatprep.mubr.f32.mxu0 %v2286_v16 }
 0x44d   :  { %9304 = vmatprep.subr.bf16.mxu0 %v10099_v34 }
 0x451   :  { %8896 = vmatmul.mubr.f32.vlgmr.msra.gmra.mrb[6].mxu1 %v5357_v5 }
 0x452   :  { %9378 = vmatpush3.bf16.xpose.msra.mxu1 %v10118_v58  ;;  %8680 = vmatmul.mubr.f32.vlgmr.msra.gmra.mrb[4].mxu0 %v2296_v19 }
 0x453   :  { %9306 = vmatpush3.bf16.msra.mxu0 %v10099_v34  ;;  %8902 = vmatprep.mubr.f32.mxu1 %v5348_v17 }
 0x454   :  { %9380 = vmatprep.subr.bf16.mxu1 %v9379_v31  ;;  %8686 = vmatprep.mubr.f32.mxu0 %v2287_v21 }
 0x455   :  { %9308 = vmatprep.subr.bf16.mxu0 %v9307_v32 }
 0x459   :  { %8903 = vmatmul.mubr.f32.vlgmr.msra.gmra.mrb[6].mxu1 %v5358_v12 }
 0x45a   :  { %9382 = vmatpush3.bf16.xpose.msra.mxu1 %v9379_v31  ;;  %8687 = vmatmul.mubr.f32.vlgmr.msra.gmra.mrb[4].mxu0 %v2297_v23 }
 0x45b   :  { %9310 = vmatpush3.bf16.msra.mxu0 %v9307_v32  ;;  %8909 = vmatprep.mubr.f32.mxu1 %v10129_v2 }
 0x45c   :  { %9384 = vmatprep.subr.bf16.mxu1 %v10118_v58  ;;  %8693 = vmatprep.mubr.f32.mxu0 %v10137_v6 }
 0x45d   :  { %9312 = vmatprep.subr.bf16.mxu0 %v10099_v34 }
 0x461   :  { %8910 = vmatmul.mubr.f32.vlgmr.msra.gmra.mrb[6].mxu1 %v10124_v63 }
 0x462   :  { %9386 = vmatpush3.bf16.xpose.msra.mxu1 %v10118_v58  ;;  %8694 = vmatmul.mubr.f32.vlgmr.msra.gmra.mrb[4].mxu0 %v10142_v11 }
 0x463   :  { %9314 = vmatpush3.bf16.msra.mxu0 %v10099_v34  ;;  %8916 = vmatprep.mubr.f32.mxu1 %v10129_v2  ;;  %v2720_v34 = vld [vmem:[#allocation5 + $0x28] sm:$0xff] }
 0x464   :  { %8700 = vmatprep.mubr.f32.mxu0 %v10137_v6  ;;  %v10180_v40 = vand.u32 4294901760, %v2720_v34 }
 0x466   :  { %8703 = vmatprep.subr.mxu0 %v10180_v40  ;;  %v2815_v41 = vsub.f32 %v2720_v34, %v10180_v40 }
 0x468   :  { %v2816_v42 = vand.u32 4294901760, %v2815_v41 }
 0x469   :  { %8917 = vmatmul.mubr.f32.vlgmr.msra.gmra.mrb[6].mxu1 %v10124_v63 }
 0x46a   :  { %8701 = vmatmul.mubr.f32.vlgmr.msra.gmra.mrb[4].mxu0 %v10142_v11  ;;  %v2817_v44 = vsub.f32 %v2815_v41, %v2816_v42 }
 0x46b   :  { %8704 = vmatpush3.msra.mxu0 %v10180_v40 }
 0x46c   :  { %v2818_v45 = vand.u32 4294901760, %v2817_v44 }
 0x46e   :  { %8708 = vmatprep.subr.mxu0 %v2818_v45 }
 0x496   :  { %v8804_v33 = vpop.f32.mrb[4].mxu1 }
 0x497   :  { %v9561_v35 = vadd.f32 %v8804_v33, %v10029_v51  ;;  %v4219_v36 = vpop.f32.mrb[5].mxu1 }
 0x498   :  { %v9562_v37 = vadd.f32 %v4219_v36, %v10031_v52 }
 0x499   :  { %v4232_v38 = vsel %vm1128_vm2, %v9561_v35, -inf }
 0x49a   :  { %4233 = vmax.xlane.f32.xlu1 %v4232_v38  ;;  %v4229_v39 = vsel %vm1128_vm2, %v9562_v37, -inf }
 0x49b   :  { %4230 = vmax.xlane.f32.xlu0 %v4229_v39 }
 0x4ab   :  { %4251 = vrot.lane.b32.xlu1 %v9999_v50, %s9892_s4 }
 0x508   :  { %v8618_v47 = vpop.f32.mrb[2].mxu0 }
 0x509   :  { %v1655_v49 = vpop.f32.mrb[3].mxu0  ;;  %v3220_v21 = vsel %vm617_vm1, %v8618_v47, 0 }
 0x50a   :  { %v3217_v17 = vsel %vm617_vm1, %v1655_v49, 0  ;;  %v3298_v13 = vand.u32 4294901760, %v3220_v21 }
 0x50b   :  { %v3288_v19 = vand.u32 4294901760, %v3217_v17 }
 0x50c   :  { %v3299_v25 = vsub.f32 %v3220_v21, %v3298_v13 }
 0x50d   :  { %v3289_v22 = vsub.f32 %v3217_v17, %v3288_v19  ;;  %v4765_v17 = vld [vmem:[#allocation5 + $0x30] sm:$0xff] }
 0x50e   :  { %v3300_v29 = vand.u32 4294901760, %v3299_v25 }
 0x50f   :  { %v3290_v24 = vand.u32 4294901760, %v3289_v22 }
 0x510   :  { %v3301_v32 = vsub.f32 %v3299_v25, %v3300_v29 }
 0x511   :  { %v3291_v27 = vsub.f32 %v3289_v22, %v3290_v24 }
 0x513   :  { %v3292_v31 = vand.u32 4294901760, %v3291_v27 }
 0x527   :  { %v4234_v53 = vpop.xlane.xlu1 %4233 }
 0x528   :  { %v4236_v54 = vsub.f32 %v9561_v35, %v4234_v53  ;;  %v4231_v55 = vpop.xlane.xlu0 %4230 }
 0x529   :  { %v4235_v56 = vsub.f32 %v9562_v37, %v4231_v55 }
 0x52a   :  { %v4239_v57 = vmul.f32 1.442695, %v4236_v54 }
 0x52b   :  { %v4237_v58 = vmul.f32 1.442695, %v4235_v56  ;;  %v4252_v33 = vpop.permute.xlu1 %4251 }
 0x52c   :  { %9758 = vpow2.f32 %v4239_v57  ;;  %v4264_v36 = vand.u32 4294901760, %v4252_v33 }
 0x52d   :  { %9760 = vpow2.f32 %v4237_v58 }
 0x52e   :  { %v4352_v38 = vsub.f32 %v4252_v33, %v4264_v36 }
 0x530   :  { %v4353_v34 = vand.u32 4294901760, %v4352_v38 }
 0x532   :  { %v4354_v54 = vsub.f32 %v4352_v38, %v4353_v34 }
 0x536   :  { %v10185_v59 = vpop.eup %9758 }
 0x537   :  { %v4244_v60 = vsel %vm1128_vm2, %v10185_v59, 0.0  ;;  %v10189_v61 = vpop.eup %9760 }
 0x538   :  { %4245 = vadd.xlane.f32.xlu0 %v4244_v60  ;;  %v4241_v62 = vsel %vm1128_vm2, %v10189_v61, 0.0 }
 0x53c   :  { %4242 = vadd.xlane.f32.xlu0 %v4241_v62  ;;  %v8918_v63 = vpop.f32.mrb[6].mxu1 }
 0x53d   :  { %v8702_v43 = vpop.f32.mrb[4].mxu0  ;;  %v5771_v0 = vpop.f32.mrb[7].mxu1  ;;  %v10208_v14 = vadd.f32 %v8918_v63, %v10029_v51  ;;  %v3302_v51 = vand.u32 4294901760, %v3301_v32  ;;  %v4355_v63 = vand.u32 4294901760, %v4354_v54 }
 0x53e   :  { %v2725_v1 = vsel %vm617_vm1, %v8702_v43, 0  ;;  %v10195_v2 = vadd.f32 %v5771_v0, %v10031_v52  ;;  %v2710_v46 = vpop.f32.mrb[5].mxu0  ;;  %v1665_v52 = vld [vmem:[#allocation5 + $0x20] sm:$0xff] }
 0x53f   :  { %v2803_v3 = vand.u32 4294901760, %v2725_v1  ;;  %v2722_v4 = vsel %vm617_vm1, %v2710_v46, 0  ;;  %v3223_v18 = vand.u32 4294901760, %v1665_v52  ;;  %v5784_v28 = vsel %vm1128_vm2, %v10208_v14, -inf }
 0x540   :  { %v2793_v5 = vand.u32 4294901760, %v2722_v4  ;;  %v5781_v6 = vsel %vm1128_vm2, %v10195_v2, -inf }
 0x541   :  { %v2804_v7 = vsub.f32 %v2725_v1, %v2803_v3  ;;  %5782 = vmax.xlane.f32.xlu1 %v5781_v6  ;;  %v3310_v20 = vsub.f32 %v1665_v52, %v3223_v18 }
 0x542   :  { %v2794_v8 = vsub.f32 %v2722_v4, %v2793_v5 }
 0x543   :  { %v2805_v9 = vand.u32 4294901760, %v2804_v7  ;;  %v3311_v23 = vand.u32 4294901760, %v3310_v20 }
 0x544   :  { %v2795_v10 = vand.u32 4294901760, %v2794_v8 }
 0x545   :  { %v2806_v11 = vsub.f32 %v2804_v7, %v2805_v9  ;;  %v3312_v26 = vsub.f32 %v3310_v20, %v3311_v23 }
 0x546   :  { %v2796_v12 = vsub.f32 %v2794_v8, %v2795_v10 }
 0x547   :  { %v2807_v16 = vand.u32 4294901760, %v2806_v11  ;;  %v3313_v30 = vand.u32 4294901760, %v3312_v26 }
 0x548   :  { %v2797_v15 = vand.u32 4294901760, %v2796_v12 }
 0x54a   :  { %8705 = vmatprep.mubr.f32.mxu0 %v2797_v15 }
 0x54b   :  { %8706 = vmatmul.mubr.f32.vlgmr.msra.gmra.mrb[6].mxu0 %v2807_v16 }
 0x54c   :  { %8710 = vmatprep.mubr.f32.mxu0 %v2793_v5  ;;  %8709 = vmatpush3.msra.mxu0 %v2818_v45 }
 0x54d   :  { %8713 = vmatprep.subr.mxu0 %v2815_v41 }
 0x552   :  { %4253 = vrot.lane.b32.xlu0 %v9997_v48, %s9892_s4 }
 0x553   :  { %8711 = vmatmul.mubr.f32.vlgmr.msra.gmra.mrb[6].mxu0 %v2803_v3 }
 0x554   :  { %8715 = vmatprep.mubr.f32.mxu0 %v2794_v8  ;;  %8714 = vmatpush3.msra.mxu0 %v2815_v41 }
 0x555   :  { %8718 = vmatprep.subr.mxu0 %v10180_v40 }
 0x55b   :  { %8716 = vmatmul.mubr.f32.vlgmr.msra.gmra.mrb[6].mxu0 %v2804_v7 }
 0x55c   :  { %8720 = vmatprep.mubr.f32.mxu0 %v2795_v10  ;;  %8719 = vmatpush3.msra.mxu0 %v10180_v40 }
 0x55d   :  { %8723 = vmatprep.subr.mxu0 %v2816_v42 }
 0x563   :  { %8721 = vmatmul.mubr.f32.vlgmr.msra.gmra.mrb[6].mxu0 %v2805_v9 }
 0x564   :  { %8725 = vmatprep.mubr.f32.mxu0 %v2793_v5  ;;  %8724 = vmatpush3.msra.mxu0 %v2816_v42 }
 0x565   :  { %8728 = vmatprep.subr.mxu0 %v10180_v40 }
 0x56b   :  { %8726 = vmatmul.mubr.f32.vlgmr.msra.gmra.mrb[6].mxu0 %v2803_v3 }
 0x56c   :  { %8730 = vmatprep.mubr.f32.mxu0 %v2793_v5  ;;  %8729 = vmatpush3.msra.mxu0 %v10180_v40 }
 0x56d   :  { %8733 = vmatprep.subr.mxu0 %v3223_v18 }
 0x571   :  { %5785 = vmax.xlane.f32.xlu0 %v5784_v28 }
 0x573   :  { %8731 = vmatmul.mubr.f32.vlgmr.msra.gmra.mrb[6].mxu0 %v2803_v3 }
 0x574   :  { %8735 = vmatprep.mubr.f32.mxu0 %v3292_v31  ;;  %8734 = vmatpush3.msra.mxu0 %v3223_v18 }
 0x575   :  { %8738 = vmatprep.subr.mxu0 %v3313_v30 }
 0x57b   :  { %8736 = vmatmul.mubr.f32.vlgmr.msra.gmra.mrb[6].mxu0 %v3302_v51 }
 0x57c   :  { %8740 = vmatprep.mubr.f32.mxu0 %v3288_v19  ;;  %8739 = vmatpush3.msra.mxu0 %v3313_v30 }
 0x57d   :  { %8743 = vmatprep.subr.mxu0 %v3310_v20 }
 0x583   :  { %8741 = vmatmul.mubr.f32.vlgmr.msra.gmra.mrb[6].mxu0 %v3298_v13 }
 0x584   :  { %8745 = vmatprep.mubr.f32.mxu0 %v3289_v22  ;;  %8744 = vmatpush3.msra.mxu0 %v3310_v20 }
 0x585   :  { %8748 = vmatprep.subr.mxu0 %v3223_v18 }
 0x58b   :  { %8746 = vmatmul.mubr.f32.vlgmr.msra.gmra.mrb[6].mxu0 %v3299_v25 }
 0x58c   :  { %8750 = vmatprep.mubr.f32.mxu0 %v3290_v24  ;;  %8749 = vmatpush3.msra.mxu0 %v3223_v18 }
 0x58d   :  { %8753 = vmatprep.subr.mxu0 %v3311_v23 }
 0x593   :  { %8751 = vmatmul.mubr.f32.vlgmr.msra.gmra.mrb[6].mxu0 %v3300_v29 }
 0x594   :  { %8755 = vmatprep.mubr.f32.mxu0 %v3288_v19  ;;  %8754 = vmatpush3.msra.mxu0 %v3311_v23 }
 0x595   :  { %8758 = vmatprep.subr.mxu0 %v3223_v18 }
 0x59b   :  { %8756 = vmatmul.mubr.f32.vlgmr.msra.gmra.mrb[6].mxu0 %v3298_v13 }
 0x59c   :  { %8760 = vmatprep.mubr.f32.mxu0 %v3288_v19  ;;  %8759 = vmatpush3.msra.mxu0 %v3223_v18  ;;  %v10226_v18 = vand.u32 4294901760, %v4765_v17 }
 0x59e   :  { %v4860_v19 = vsub.f32 %v4765_v17, %v10226_v18 }
 0x5a0   :  { %v4861_v20 = vand.u32 4294901760, %v4860_v19 }
 0x5a2   :  { %v4862_v21 = vsub.f32 %v4860_v19, %v4861_v20 }
 0x5a3   :  { %8761 = vmatmul.mubr.f32.vlgmr.msra.gmra.mrb[6].mxu0 %v3298_v13 }
 0x5a4   :  { %v4863_v22 = vand.u32 4294901760, %v4862_v21 }
 0x5c5   :  { %v4246_v35 = vpop.xlane.xlu0 %4245 }
 0x5c6   :  { %9762 = vrcp.f32 %v4246_v35 }
 0x5c9   :  { %v4243_v37 = vpop.xlane.xlu0 %4242 }
 0x5ca   :  { %9764 = vrcp.f32 %v4243_v37 }
 0x5cd   :  { %v4254_v39 = vpop.permute.xlu0 %4253 }
 0x5ce   :  { %v4267_v40 = vand.u32 4294901760, %v4254_v39  ;;  %v5783_v41 = vpop.xlane.xlu1 %5782 }
 0x5cf   :  { %v5787_v42 = vsub.f32 %v10195_v2, %v5783_v41 }
 0x5d0   :  { %v9763_v44 = vpop.eup %9762  ;;  %v9339_v45 = vpack.c.bf16 %v4267_v40, %v4264_v36  ;;  %v4359_v47 = vsub.f32 %v4254_v39, %v4267_v40 }
 0x5d1   :  { %v4250_v49 = vmul.f32 %v9763_v44, %v10185_v59  ;;  %v5789_v53 = vmul.f32 1.442695, %v5787_v42 }
 0x5d2   :  { %v4360_v55 = vand.u32 4294901760, %v4359_v47  ;;  %9340 = vmatprep.subr.bf16.mxu0 %v9339_v45  ;;  %v9347_v10 = vpack.c.bf16 %v4359_v47, %v4352_v38 }
 0x5d3   :  { %9766 = vpow2.f32 %v5789_v53  ;;  %9342 = vmatpush3.bf16.msra.mxu0 %v9339_v45  ;;  %v4261_v56 = vsel %vm1128_vm2, %v4250_v49, 0 }
 0x5d4   :  { %v9765_v57 = vpop.eup %9764  ;;  %v4361_v58 = vsub.f32 %v4359_v47, %v4360_v55  ;;  %v4340_v60 = vand.u32 4294901760, %v4261_v56  ;;  %v9355_v11 = vpack.c.bf16 %v4360_v55, %v4353_v34 }
 0x5d5   :  { %v4248_v62 = vmul.f32 %v9765_v57, %v10189_v61 }
 0x5d6   :  { %v4362_v43 = vand.u32 4294901760, %v4361_v58  ;;  %v4341_v0 = vsub.f32 %v4261_v56, %v4340_v60 }
 0x5d7   :  { %v4258_v1 = vsel %vm1128_vm2, %v4248_v62, 0 }
 0x5d8   :  { %v9343_v2 = vpack.c.bf16 %v4362_v43, %v4355_v63  ;;  %v4330_v59 = vand.u32 4294901760, %v4258_v1  ;;  %v4342_v46 = vand.u32 4294901760, %v4341_v0 }
 0x5da   :  { %9344 = vmatprep.subr.bf16.mxu0 %v9343_v2  ;;  %v4331_v3 = vsub.f32 %v4258_v1, %v4330_v59  ;;  %v4343_v6 = vsub.f32 %v4341_v0, %v4342_v46 }
 0x5dc   :  { %v4332_v4 = vand.u32 4294901760, %v4331_v3  ;;  %v4344_v9 = vand.u32 4294901760, %v4343_v6 }
 0x5dd   :  { %v10218_v5 = vpop.eup %9766 }
 0x5de   :  { %v5793_v7 = vsel %vm1128_vm2, %v10218_v5, 0.0  ;;  %v4333_v8 = vsub.f32 %v4331_v3, %v4332_v4 }
 0x5df   :  { %5794 = vadd.xlane.f32.xlu1 %v5793_v7 }
 0x5e0   :  { %v4334_v61 = vand.u32 4294901760, %v4333_v8  ;;  %v6317_v8 = vld [vmem:[#allocation5 + $0x38] sm:$0xff] }
 0x5e2   :  { %8809 = vmatprep.mubr.f32.mxu0 %v4334_v61  ;;  %v6325_v61 = vand.u32 4294901760, %v6317_v8 }
 0x5e3   :  { %8810 = vmatmul.mubr.f32.vlgmr.msra.gmra.mrb[8].mxu0 %v4344_v9 }
 0x5e4   :  { %9346 = vmatpush3.bf16.msra.mxu0 %v9343_v2  ;;  %8816 = vmatprep.mubr.f32.mxu0 %v4330_v59  ;;  %v6412_v9 = vsub.f32 %v6317_v8, %v6325_v61 }
 0x5e5   :  { %9348 = vmatprep.subr.bf16.mxu0 %v9347_v10 }
 0x5eb   :  { %8817 = vmatmul.mubr.f32.vlgmr.msra.gmra.mrb[8].mxu0 %v4340_v60 }
 0x5ec   :  { %9350 = vmatpush3.bf16.msra.mxu0 %v9347_v10  ;;  %8823 = vmatprep.mubr.f32.mxu0 %v4331_v3  ;;  %v6413_v10 = vand.u32 4294901760, %v6412_v9 }
 0x5ed   :  { %9352 = vmatprep.subr.bf16.mxu0 %v9339_v45 }
 0x5f0   :  { %5803 = vrot.lane.b32.xlu1 %v9999_v50, %s9893_s5 }
 0x5f3   :  { %8824 = vmatmul.mubr.f32.vlgmr.msra.gmra.mrb[8].mxu0 %v4341_v0 }
 0x5f4   :  { %9354 = vmatpush3.bf16.msra.mxu0 %v9339_v45  ;;  %8830 = vmatprep.mubr.f32.mxu0 %v4332_v4 }
 0x5f5   :  { %9356 = vmatprep.subr.bf16.mxu0 %v9355_v11 }
 0x5fb   :  { %8831 = vmatmul.mubr.f32.vlgmr.msra.gmra.mrb[8].mxu0 %v4342_v46 }
 0x5fc   :  { %9358 = vmatpush3.bf16.msra.mxu0 %v9355_v11  ;;  %8837 = vmatprep.mubr.f32.mxu0 %v4330_v59  ;;  %v6414_v11 = vsub.f32 %v6412_v9, %v6413_v10 }
 0x5fd   :  { %9360 = vmatprep.subr.bf16.mxu0 %v9339_v45 }
 0x5fe   :  { %v5786_v12 = vpop.xlane.xlu0 %5785 }
 0x5ff   :  { %v5788_v15 = vsub.f32 %v10208_v14, %v5786_v12  ;;  %v6415_v12 = vand.u32 4294901760, %v6414_v11 }
 0x601   :  { %v5791_v16 = vmul.f32 1.442695, %v5788_v15 }
 0x603   :  { %9768 = vpow2.f32 %v5791_v16  ;;  %8838 = vmatmul.mubr.f32.vlgmr.msra.gmra.mrb[8].mxu0 %v4340_v60 }
 0x604   :  { %9362 = vmatpush3.bf16.msra.mxu0 %v9339_v45  ;;  %8844 = vmatprep.mubr.f32.mxu0 %v4330_v59 }
 0x605   :  { %8847 = vmatprep.subr.mxu0 %v10226_v18 }
 0x60b   :  { %8845 = vmatmul.mubr.f32.vlgmr.msra.gmra.mrb[8].mxu0 %v4340_v60 }
 0x60c   :  { %8848 = vmatpush3.msra.mxu0 %v10226_v18 }
 0x60d   :  { %v9769_v52 = vpop.eup %9768  ;;  %8852 = vmatprep.subr.mxu0 %v4863_v22 }
 0x60e   :  { %v5796_v50 = vsel %vm1128_vm2, %v9769_v52, 0.0 }
 0x60f   :  { %5797 = vadd.xlane.f32.xlu0 %v5796_v50 }
 0x625   :  { %5805 = vrot.lane.b32.xlu0 %v9997_v48, %s9893_s5 }
 0x66c   :  { %v5795_v33 = vpop.xlane.xlu1 %5794 }
 0x66d   :  { %9770 = vrcp.f32 %v5795_v33 }
 0x670   :  { %v5804_v34 = vpop.permute.xlu1 %5803 }
 0x671   :  { %v5816_v44 = vand.u32 4294901760, %v5804_v34 }
 0x673   :  { %v5904_v53 = vsub.f32 %v5804_v34, %v5816_v44 }
 0x675   :  { %v5905_v57 = vand.u32 4294901760, %v5904_v53 }
 0x677   :  { %v9771_v36 = vpop.eup %9770  ;;  %v5906_v43 = vsub.f32 %v5904_v53, %v5905_v57 }
 0x678   :  { %v5800_v38 = vmul.f32 %v9771_v36, %v10218_v5 }
 0x679   :  { %v5907_v59 = vand.u32 4294901760, %v5906_v43 }
 0x67a   :  { %v5810_v42 = vsel %vm1128_vm2, %v5800_v38, 0 }
 0x67b   :  { %v5882_v45 = vand.u32 4294901760, %v5810_v42 }
 0x67d   :  { %v5883_v55 = vsub.f32 %v5810_v42, %v5882_v45 }
 0x67f   :  { %v5884_v60 = vand.u32 4294901760, %v5883_v55 }
 0x681   :  { %v5885_v1 = vsub.f32 %v5883_v55, %v5884_v60 }
 0x683   :  { %v5886_v3 = vand.u32 4294901760, %v5885_v1 }
 0x69c   :  { %v5798_v35 = vpop.xlane.xlu0 %5797 }
 0x69d   :  { %9772 = vrcp.f32 %v5798_v35 }
 0x6a0   :  { %v5806_v39 = vpop.permute.xlu0 %5805 }
 0x6a1   :  { %v5819_v41 = vand.u32 4294901760, %v5806_v39 }
 0x6a3   :  { %v5911_v49 = vsub.f32 %v5806_v39, %v5819_v41  ;;  %v9387_v62 = vpack.c.bf16 %v5819_v41, %v5816_v44 }
 0x6a5   :  { %v5912_v56 = vand.u32 4294901760, %v5911_v49  ;;  %v9395_v6 = vpack.c.bf16 %v5911_v49, %v5904_v53 }
 0x6a7   :  { %v9773_v37 = vpop.eup %9772  ;;  %v5913_v63 = vsub.f32 %v5911_v49, %v5912_v56  ;;  %v9403_v7 = vpack.c.bf16 %v5912_v56, %v5905_v57  ;;  %v6864_v49 = vld [vmem:[#allocation5 + $0x50] sm:$0xff] }
 0x6a8   :  { %v5802_v40 = vmul.f32 %v9773_v37, %v9769_v52  ;;  %v6891_v56 = vand.u32 4294901760, %v6864_v49 }
 0x6a9   :  { %v5914_v2 = vand.u32 4294901760, %v5913_v63 }
 0x6aa   :  { %v5813_v47 = vsel %vm1128_vm2, %v5802_v40, 0 }
 0x6ab   :  { %v5892_v54 = vand.u32 4294901760, %v5813_v47  ;;  %v9391_v4 = vpack.c.bf16 %v5914_v2, %v5907_v59  ;;  %v6989_v59 = vsub.f32 %v6864_v49, %v6891_v56  ;;  %v6869_v49 = vld [vmem:[#allocation5 + $0x78] sm:$0xff] }
 0x6ad   :  { %v5893_v58 = vsub.f32 %v5813_v47, %v5892_v54  ;;  %v6863_v47 = vld [vmem:[#allocation5 + $0x48] sm:$0xff] }
 0x6af   :  { %v5894_v0 = vand.u32 4294901760, %v5893_v58 }
 0x6b1   :  { %v5895_v46 = vsub.f32 %v5893_v58, %v5894_v0 }
 0x6b3   :  { %v5896_v5 = vand.u32 4294901760, %v5895_v46 }
 0x6de   :  { %v8846_v13 = vpop.f32.mrb[8].mxu0 }
 0x6df   :  { %v4770_v23 = vsel %vm617_vm1, %v8846_v13, 0  ;;  %v4755_v24 = vpop.f32.mrb[9].mxu0 }
 0x6e0   :  { %v10232_v14 = vand.u32 4294901760, %v4770_v23  ;;  %v4767_v48 = vsel %vm617_vm1, %v4755_v24, 0 }
 0x6e1   :  { %v4838_v25 = vand.u32 4294901760, %v4767_v48 }
 0x6e2   :  { %v4849_v26 = vsub.f32 %v4770_v23, %v10232_v14 }
 0x6e3   :  { %v4839_v27 = vsub.f32 %v4767_v48, %v4838_v25  ;;  %v8066_v48 = vld [vmem:[#allocation7 + $0x1] ss:$0 sm:$0xff] }
 0x6e4   :  { %v4850_v28 = vand.u32 4294901760, %v4849_v26 }
 0x6e5   :  { %v4840_v29 = vand.u32 4294901760, %v4839_v27 }
 0x6e6   :  { %v4851_v30 = vsub.f32 %v4849_v26, %v4850_v28 }
 0x6e7   :  { %v4841_v31 = vsub.f32 %v4839_v27, %v4840_v29 }
 0x6e8   :  { %v4852_v51 = vand.u32 4294901760, %v4851_v30 }
 0x6e9   :  { %v4842_v32 = vand.u32 4294901760, %v4841_v31  ;;  %v9783_v31 = vld [vmem:[#allocation2] sm:$0xff] }
 0x6eb   :  { %8849 = vmatprep.mubr.f32.mxu0 %v4842_v32 }
 0x6ec   :  { %8850 = vmatmul.mubr.f32.vlgmr.msra.gmra.mrb[6].mxu0 %v4852_v51 }
 0x6ed   :  { %8853 = vmatpush3.msra.mxu0 %v4863_v22  ;;  %8854 = vmatprep.mubr.f32.mxu0 %v4838_v25 }
 0x6ee   :  { %8857 = vmatprep.subr.mxu0 %v4860_v19 }
 0x6f4   :  { %8855 = vmatmul.mubr.f32.vlgmr.msra.gmra.mrb[6].mxu0 %v10232_v14 }
 0x6f5   :  { %8858 = vmatpush3.msra.mxu0 %v4860_v19  ;;  %8859 = vmatprep.mubr.f32.mxu0 %v4839_v27 }
 0x6f6   :  { %8862 = vmatprep.subr.mxu0 %v10226_v18 }
 0x6fc   :  { %8860 = vmatmul.mubr.f32.vlgmr.msra.gmra.mrb[6].mxu0 %v4849_v26 }
 0x6fd   :  { %8863 = vmatpush3.msra.mxu0 %v10226_v18  ;;  %8864 = vmatprep.mubr.f32.mxu0 %v4840_v29  ;;  %v9782_v29 = vld [vmem:[#allocation2 + $0x8] sm:$0xff] }
 0x6fe   :  { %8867 = vmatprep.subr.mxu0 %v4861_v20 }
 0x704   :  { %8865 = vmatmul.mubr.f32.vlgmr.msra.gmra.mrb[6].mxu0 %v4850_v28 }
 0x705   :  { %8868 = vmatpush3.msra.mxu0 %v4861_v20  ;;  %8869 = vmatprep.mubr.f32.mxu0 %v4838_v25 }
 0x706   :  { %8872 = vmatprep.subr.mxu0 %v10226_v18 }
 0x70c   :  { %8870 = vmatmul.mubr.f32.vlgmr.msra.gmra.mrb[6].mxu0 %v10232_v14 }
 0x70d   :  { %8873 = vmatpush3.msra.mxu0 %v10226_v18  ;;  %8874 = vmatprep.mubr.f32.mxu0 %v4838_v25 }
 0x70e   :  { %9388 = vmatprep.subr.bf16.mxu0 %v9387_v62 }
 0x714   :  { %8875 = vmatmul.mubr.f32.vlgmr.msra.gmra.mrb[6].mxu0 %v10232_v14 }
 0x715   :  { %9390 = vmatpush3.bf16.msra.mxu0 %v9387_v62  ;;  %8923 = vmatprep.mubr.f32.mxu0 %v5886_v3 }
 0x716   :  { %9392 = vmatprep.subr.bf16.mxu0 %v9391_v4 }
 0x718   :  { %8924 = vmatmul.mubr.f32.vlgmr.msra.gmra.mrb[10].mxu0 %v5896_v5  ;;  %v6990_v5 = vand.u32 4294901760, %v6989_v59 }
 0x719   :  { %9394 = vmatpush3.bf16.msra.mxu0 %v9391_v4  ;;  %8930 = vmatprep.mubr.f32.mxu0 %v5882_v45 }
 0x71a   :  { %9396 = vmatprep.subr.bf16.mxu0 %v9395_v6  ;;  %v6991_v8 = vsub.f32 %v6989_v59, %v6990_v5 }
 0x720   :  { %8931 = vmatmul.mubr.f32.vlgmr.msra.gmra.mrb[10].mxu0 %v5892_v54 }
 0x721   :  { %9398 = vmatpush3.bf16.msra.mxu0 %v9395_v6  ;;  %8937 = vmatprep.mubr.f32.mxu0 %v5883_v55  ;;  %v6865_v55 = vld [vmem:[#allocation5 + $0x58] sm:$0xff] }
 0x722   :  { %9400 = vmatprep.subr.bf16.mxu0 %v9387_v62  ;;  %v6894_v57 = vand.u32 4294901760, %v6865_v55 }
 0x724   :  { %v6996_v46 = vsub.f32 %v6865_v55, %v6894_v57 }
 0x726   :  { %v6997_v6 = vand.u32 4294901760, %v6996_v46 }
 0x728   :  { %8938 = vmatmul.mubr.f32.vlgmr.msra.gmra.mrb[10].mxu0 %v5893_v58 }
 0x729   :  { %9402 = vmatpush3.bf16.msra.mxu0 %v9387_v62  ;;  %8944 = vmatprep.mubr.f32.mxu0 %v5884_v60  ;;  %v10262_v60 = vpack.c.bf16 %v6894_v57, %v6891_v56  ;;  %v6870_v56 = vld [vmem:[#allocation5 + $0x80] sm:$0xff]  ;;  %v6871_v57 = vld [vmem:[#allocation5 + $0x88] sm:$0xff] }
 0x72a   :  { %9404 = vmatprep.subr.bf16.mxu0 %v9403_v7 }
 0x730   :  { %8945 = vmatmul.mubr.f32.vlgmr.msra.gmra.mrb[10].mxu0 %v5894_v0 }
 0x731   :  { %9406 = vmatpush3.bf16.msra.mxu0 %v9403_v7  ;;  %8951 = vmatprep.mubr.f32.mxu0 %v5882_v45 }
 0x732   :  { %9408 = vmatprep.subr.bf16.mxu0 %v9387_v62 }
 0x738   :  { %8952 = vmatmul.mubr.f32.vlgmr.msra.gmra.mrb[10].mxu0 %v5892_v54 }
 0x739   :  { %9410 = vmatpush3.bf16.msra.mxu0 %v9387_v62  ;;  %8958 = vmatprep.mubr.f32.mxu0 %v5882_v45  ;;  %v6862_v45 = vld [vmem:[#allocation5 + $0x40] sm:$0xff] }
 0x73a   :  { %8961 = vmatprep.subr.mxu0 %v6325_v61  ;;  %v6885_v53 = vand.u32 4294901760, %v6862_v45 }
 0x73c   :  { %v6975_v62 = vsub.f32 %v6862_v45, %v6885_v53 }
 0x73e   :  { %v6976_v43 = vand.u32 4294901760, %v6975_v62 }
 0x740   :  { %8959 = vmatmul.mubr.f32.vlgmr.msra.gmra.mrb[10].mxu0 %v5892_v54  ;;  %v6888_v54 = vand.u32 4294901760, %v6863_v47  ;;  %v6977_v1 = vsub.f32 %v6975_v62, %v6976_v43 }
 0x741   :  { %8962 = vmatpush3.msra.mxu0 %v6325_v61 }
 0x742   :  { %8966 = vmatprep.subr.mxu0 %v6415_v12  ;;  %v10260_v58 = vpack.c.bf16 %v6888_v54, %v6885_v53  ;;  %v6982_v63 = vsub.f32 %v6863_v47, %v6888_v54  ;;  %v6978_v3 = vand.u32 4294901760, %v6977_v1  ;;  %v6868_v47 = vld [vmem:[#allocation5 + $0x70] sm:$0xff]  ;;  %v7435_v54 = vand.u32 4294901760, %v6869_v49 }
 0x743   :  { %v7432_v53 = vand.u32 4294901760, %v6868_v47 }
 0x744   :  { %9412 = vmatprep.subr.bf16.mxu1 %v10260_v58  ;;  %v6983_v0 = vand.u32 4294901760, %v6982_v63 }
 0x745   :  { %9414 = vmatpush3.bf16.msra.mxu1 %v10260_v58  ;;  %v10302_v55 = vpack.c.bf16 %v7435_v54, %v7432_v53 }
 0x746   :  { %9416 = vmatprep.subr.bf16.mxu1 %v10262_v60  ;;  %v6984_v2 = vsub.f32 %v6982_v63, %v6983_v0 }
 0x748   :  { %v6985_v4 = vand.u32 4294901760, %v6984_v2 }
 0x749   :  { %9418 = vmatpush3.bf16.msra.mxu1 %v10262_v60 }
 0x74a   :  { %v9419_v7 = vpack.c.bf16 %v6985_v4, %v6978_v3 }
 0x74c   :  { %9420 = vmatprep.subr.bf16.mxu1 %v9419_v7 }
 0x813   :  { %v8960_v15 = vpop.f32.mrb[10].mxu0 }
 0x814   :  { %v6322_v16 = vsel %vm617_vm1, %v8960_v15, 0  ;;  %v6307_v52 = vpop.f32.mrb[11].mxu0  ;;  %v9431_v15 = vpack.c.bf16 %v6996_v46, %v6989_v59 }
 0x815   :  { %v6400_v50 = vand.u32 4294901760, %v6322_v16  ;;  %v6319_v17 = vsel %vm617_vm1, %v6307_v52, 0  ;;  %v9447_v52 = vpack.c.bf16 %v6997_v6, %v6990_v5 }
 0x816   :  { %v6390_v18 = vand.u32 4294901760, %v6319_v17 }
 0x817   :  { %v6401_v19 = vsub.f32 %v6322_v16, %v6400_v50  ;;  %v9443_v16 = vpack.c.bf16 %v6983_v0, %v6976_v43  ;;  %v6873_v43 = vld [vmem:[#allocation5 + $0x98] sm:$0xff] }
 0x818   :  { %v6391_v20 = vsub.f32 %v6319_v17, %v6390_v18  ;;  %v10270_v17 = vld [vmem:[#allocation5 + $0x68] sm:$0xff]  ;;  %v7447_v1 = vand.u32 4294901760, %v6873_v43 }
 0x819   :  { %v6402_v21 = vand.u32 4294901760, %v6401_v19 }
 0x81a   :  { %v6392_v22 = vand.u32 4294901760, %v6391_v20 }
 0x81b   :  { %v6403_v13 = vsub.f32 %v6401_v19, %v6402_v21 }
 0x81c   :  { %v6393_v23 = vsub.f32 %v6391_v20, %v6392_v22 }
 0x81d   :  { %v6404_v14 = vand.u32 4294901760, %v6403_v13 }
 0x81e   :  { %v6394_v24 = vand.u32 4294901760, %v6393_v23 }
 0x820   :  { %8963 = vmatprep.mubr.f32.mxu0 %v6394_v24 }
 0x821   :  { %8964 = vmatmul.mubr.f32.vlgmr.msra.gmra.mrb[6].mxu0 %v6404_v14 }
 0x822   :  { %8967 = vmatpush3.msra.mxu0 %v6415_v12  ;;  %8968 = vmatprep.mubr.f32.mxu0 %v6390_v18  ;;  %v9427_v12 = vpack.c.bf16 %v6982_v63, %v6975_v62  ;;  %v7441_v62 = vand.u32 4294901760, %v6871_v57  ;;  %v6872_v63 = vld [vmem:[#allocation5 + $0x90] sm:$0xff] }
 0x823   :  { %8971 = vmatprep.subr.mxu0 %v6412_v9  ;;  %v7444_v0 = vand.u32 4294901760, %v6872_v63 }
 0x825   :  { %v10314_v2 = vpack.c.bf16 %v7447_v1, %v7444_v0 }
 0x829   :  { %8969 = vmatmul.mubr.f32.vlgmr.msra.gmra.mrb[6].mxu0 %v6400_v50 }
 0x82a   :  { %8972 = vmatpush3.msra.mxu0 %v6412_v9  ;;  %8973 = vmatprep.mubr.f32.mxu0 %v6391_v20  ;;  %v6992_v9 = vand.u32 4294901760, %v6991_v8  ;;  %v7534_v8 = vsub.f32 %v6868_v47, %v7432_v53 }
 0x82b   :  { %8976 = vmatprep.subr.mxu0 %v6325_v61 }
 0x831   :  { %8974 = vmatmul.mubr.f32.vlgmr.msra.gmra.mrb[6].mxu0 %v6401_v19  ;;  %v7429_v19 = vand.u32 4294901760, %v10270_v17 }
 0x832   :  { %8977 = vmatpush3.msra.mxu0 %v6325_v61  ;;  %8978 = vmatprep.mubr.f32.mxu0 %v6392_v22 }
 0x833   :  { %8981 = vmatprep.subr.mxu0 %v6413_v10 }
 0x839   :  { %8979 = vmatmul.mubr.f32.vlgmr.msra.gmra.mrb[6].mxu0 %v6402_v21 }
 0x83a   :  { %8982 = vmatpush3.msra.mxu0 %v6413_v10  ;;  %8983 = vmatprep.mubr.f32.mxu0 %v6390_v18 }
 0x83b   :  { %8986 = vmatprep.subr.mxu0 %v6325_v61 }
 0x841   :  { %8984 = vmatmul.mubr.f32.vlgmr.msra.gmra.mrb[6].mxu0 %v6400_v50 }
 0x842   :  { %8987 = vmatpush3.msra.mxu0 %v6325_v61  ;;  %8988 = vmatprep.mubr.f32.mxu0 %v6390_v18  ;;  %v6998_v61 = vsub.f32 %v6996_v46, %v6997_v6  ;;  %v7527_v46 = vsub.f32 %v10270_v17, %v7429_v19 }
 0x844   :  { %v6999_v10 = vand.u32 4294901760, %v6998_v61  ;;  %v7528_v4 = vand.u32 4294901760, %v7527_v46  ;;  %v7541_v61 = vsub.f32 %v6869_v49, %v7435_v54 }
 0x846   :  { %v9423_v11 = vpack.c.bf16 %v6999_v10, %v6992_v9 }
 0x849   :  { %8989 = vmatmul.mubr.f32.vlgmr.msra.gmra.mrb[6].mxu0 %v6400_v50  ;;  %v10268_v50 = vld [vmem:[#allocation5 + $0x60] sm:$0xff] }
 0x84a   :  { %v7426_v18 = vand.u32 4294901760, %v10268_v50 }
 0x84c   :  { %v10278_v20 = vpack.c.bf16 %v7429_v19, %v7426_v18  ;;  %v7520_v59 = vsub.f32 %v10268_v50, %v7426_v18  ;;  %v7555_v50 = vsub.f32 %v6871_v57, %v7441_v62 }
 0x84e   :  { %9508 = vmatprep.subr.bf16.mxu0 %v10278_v20  ;;  %v7521_v3 = vand.u32 4294901760, %v7520_v59 }
 0x84f   :  { %9510 = vmatpush3.bf16.msra.mxu0 %v10278_v20 }
 0x850   :  { %9512 = vmatprep.subr.bf16.mxu0 %v10302_v55  ;;  %v9523_v5 = vpack.c.bf16 %v7528_v4, %v7521_v3  ;;  %v7522_v6 = vsub.f32 %v7520_v59, %v7521_v3 }
 0x852   :  { %v7523_v9 = vand.u32 4294901760, %v7522_v6 }
 0x853   :  { %9514 = vmatpush3.bf16.msra.mxu0 %v10302_v55 }
 0x91c   :  { %v8990_v25 = vpop.f32.mrb[6].mxu0 }
 0x91d   :  { %v6820_v26 = vadd.f32 %v8990_v25, %v8066_v48  ;;  %v6803_v27 = vpop.f32.mrb[7].mxu0  ;;  %v8067_v25 = vld [vmem:[#allocation7 + $0x2] ss:$0 sm:$0xff] }
 0x91e   :  { %v6819_v28 = vadd.f32 %v8066_v48, %v6803_v27 }
 0x91f   :  { %v6822_v30 = vadd.f32 %v9782_v29, %v6820_v26  ;;  %v8068_v29 = vld [vmem:[#allocation7 + $0x3] ss:$0 sm:$0xff] }
 0x920   :  { %v6821_v32 = vadd.f32 %v9783_v31, %v6819_v28 }
 0x921   :  { %v6826_v51 = vsel %vm76_vm0, %v6822_v30, 0.0 }
 0x922   :  { %6827 = vadd.xlane.f32.xlu0 %v6826_v51  ;;  %v6823_v33 = vsel %vm76_vm0, %v6821_v32, 0.0 }
 0x923   :  { %6824 = vadd.xlane.f32.xlu1 %v6823_v33 }
 0x9af   :  { %v6828_v35 = vpop.xlane.xlu0 %6827 }
 0x9b0   :  { %v6831_v36 = vmul.f32 0.03125, %v6828_v35  ;;  %v6825_v37 = vpop.xlane.xlu1 %6824 }
 0x9b1   :  { %v6830_v38 = vmul.f32 0.03125, %v6825_v37 }
 0x9b2   :  { %v10250_v39 = vsub.f32 %v6822_v30, %v6831_v36 }
 0x9b3   :  { %v10252_v34 = vsub.f32 %v6821_v32, %v6830_v38 }
 0x9b4   :  { %v6835_v40 = vmul.f32 %v10250_v39, %v10250_v39 }
 0x9b5   :  { %v6834_v41 = vmul.f32 %v10252_v34, %v10252_v34 }
 0x9b6   :  { %v6839_v42 = vsel %vm76_vm0, %v6835_v40, 0.0 }
 0x9b7   :  { %6840 = vadd.xlane.f32.xlu0 %v6839_v42  ;;  %v6836_v44 = vsel %vm76_vm0, %v6834_v41, 0.0 }
 0x9b8   :  { %6837 = vadd.xlane.f32.xlu1 %v6836_v44 }
 0xa44   :  { %v6841_v21 = vpop.xlane.xlu0 %6840 }
 0xa45   :  { %v6843_v22 = vmul.f32 0.03125, %v6841_v21  ;;  %v6838_v13 = vpop.xlane.xlu1 %6837 }
 0xa46   :  { %v6842_v23 = vmul.f32 0.03125, %v6838_v13 }
 0xa47   :  { %v6845_v24 = vadd.f32 1e-05, %v6843_v22  ;;  %v7556_v22 = vand.u32 4294901760, %v7555_v50 }
 0xa48   :  { %v6844_v14 = vadd.f32 1e-05, %v6842_v23 }
 0xa49   :  { %9774 = vrsqrt.f32 %v6845_v24 }
 0xa4a   :  { %9776 = vrsqrt.f32 %v6844_v14  ;;  %v7557_v14 = vsub.f32 %v7555_v50, %v7556_v22 }
 0xa53   :  { %v9775_v48 = vpop.eup %9774 }
 0xa54   :  { %v9777_v26 = vpop.eup %9776  ;;  %v6849_v27 = vmul.f32 %v9775_v48, %v10250_v39  ;;  %v7562_v48 = vsub.f32 %v6872_v63, %v7444_v0 }
 0xa55   :  { %v6848_v28 = vmul.f32 %v9777_v26, %v10252_v34  ;;  %v7569_v26 = vsub.f32 %v6873_v43, %v7447_v1 }
 0xa56   :  { %v6855_v30 = vmul.f32 %v8067_v25, %v6849_v27 }
 0xa57   :  { %v6854_v31 = vmul.f32 %v8067_v25, %v6848_v28  ;;  %v7558_v28 = vand.u32 4294901760, %v7557_v14 }
 0xa58   :  { %v10284_v32 = vadd.f32 %v8068_v29, %v6855_v30  ;;  %v7570_v30 = vand.u32 4294901760, %v7569_v26 }
 0xa59   :  { %v10286_v51 = vadd.f32 %v8068_v29, %v6854_v31  ;;  %v7563_v29 = vand.u32 4294901760, %v7562_v48 }
 0xa5a   :  { %v6882_v33 = vsel %vm76_vm0, %v10284_v32, 0 }
 0xa5b   :  { %v6879_v35 = vsel %vm76_vm0, %v10286_v51, 0  ;;  %v6963_v36 = vand.u32 4294901760, %v6882_v33 }
 0xa5c   :  { %v6953_v37 = vand.u32 4294901760, %v6879_v35 }
 0xa5d   :  { %v6964_v38 = vsub.f32 %v6882_v33, %v6963_v36  ;;  %v7564_v33 = vsub.f32 %v7562_v48, %v7563_v29 }
 0xa5e   :  { %v6954_v40 = vsub.f32 %v6879_v35, %v6953_v37  ;;  %v9535_v35 = vpack.c.bf16 %v7570_v30, %v7563_v29 }
 0xa5f   :  { %v6965_v39 = vand.u32 4294901760, %v6964_v38 }
 0xa60   :  { %v6955_v41 = vand.u32 4294901760, %v6954_v40 }
 0xa61   :  { %v6966_v34 = vsub.f32 %v6964_v38, %v6965_v39 }
 0xa62   :  { %v6956_v42 = vsub.f32 %v6954_v40, %v6955_v41 }
 0xa63   :  { %v6967_v45 = vand.u32 4294901760, %v6966_v34 }
 0xa64   :  { %v6957_v44 = vand.u32 4294901760, %v6956_v42  ;;  %v9503_v42 = vpack.c.bf16 %v7569_v26, %v7562_v48 }
 0xa66   :  { %8999 = vmatprep.mubr.f32.mxu1 %v6957_v44  ;;  %v8069_v44 = vld [vmem:[#allocation7 + $0x4] ss:$0 sm:$0xff] }
 0xa67   :  { %9000 = vmatmul.mubr.f32.vlgmr.msra.gmra.mrb[8].mxu1 %v6967_v45 }
 0xa68   :  { %9422 = vmatpush3.bf16.msra.mxu1 %v9419_v7  ;;  %9010 = vmatprep.mubr.f32.mxu1 %v6953_v37  ;;  %v7529_v7 = vsub.f32 %v7527_v46, %v7528_v4 }
 0xa69   :  { %9424 = vmatprep.subr.bf16.mxu1 %v9423_v11 }
 0xa6a   :  { %v7530_v10 = vand.u32 4294901760, %v7529_v7  ;;  %v8070_v7 = vld [vmem:[#allocation7 + $0x5] ss:$0 sm:$0xff] }
 0xa6c   :  { %9426 = vmatpush3.bf16.msra.mxu1 %v9423_v11  ;;  %v7535_v11 = vand.u32 4294901760, %v7534_v8 }
 0xa6d   :  { %9428 = vmatprep.subr.bf16.mxu1 %v9427_v12 }
 0xa6f   :  { %9011 = vmatmul.mubr.f32.vlgmr.msra.gmra.mrb[8].mxu1 %v6963_v36 }
 0xa70   :  { %9430 = vmatpush3.bf16.msra.mxu1 %v9427_v12  ;;  %9021 = vmatprep.mubr.f32.mxu1 %v6954_v40  ;;  %v7542_v12 = vand.u32 4294901760, %v7541_v61 }
 0xa71   :  { %9432 = vmatprep.subr.bf16.mxu1 %v9431_v15 }
 0xa72   :  { %v9527_v17 = vpack.c.bf16 %v7542_v12, %v7535_v11  ;;  %v7543_v18 = vsub.f32 %v7541_v61, %v7542_v12 }
 0xa74   :  { %9434 = vmatpush3.bf16.msra.mxu1 %v9431_v15  ;;  %v9475_v15 = vpack.c.bf16 %v7530_v10, %v7523_v9  ;;  %v7544_v13 = vand.u32 4294901760, %v7543_v18 }
 0xa75   :  { %9436 = vmatprep.subr.bf16.mxu1 %v10260_v58 }
 0xa77   :  { %9022 = vmatmul.mubr.f32.vlgmr.msra.gmra.mrb[8].mxu1 %v6964_v38 }
 0xa78   :  { %9438 = vmatpush3.bf16.msra.mxu1 %v10260_v58  ;;  %9032 = vmatprep.mubr.f32.mxu1 %v6955_v41  ;;  %v9495_v41 = vpack.c.bf16 %v7541_v61, %v7534_v8 }
 0xa79   :  { %9440 = vmatprep.subr.bf16.mxu1 %v10262_v60 }
 0xa7c   :  { %9442 = vmatpush3.bf16.msra.mxu1 %v10262_v60 }
 0xa7d   :  { %9444 = vmatprep.subr.bf16.mxu1 %v9443_v16 }
 0xa7f   :  { %9033 = vmatmul.mubr.f32.vlgmr.msra.gmra.mrb[8].mxu1 %v6965_v39  ;;  %v9491_v39 = vpack.c.bf16 %v7527_v46, %v7520_v59 }
 0xa80   :  { %9446 = vmatpush3.bf16.msra.mxu1 %v9443_v16  ;;  %9043 = vmatprep.mubr.f32.mxu1 %v6953_v37  ;;  %v7536_v16 = vsub.f32 %v7534_v8, %v7535_v11 }
 0xa81   :  { %9448 = vmatprep.subr.bf16.mxu1 %v9447_v52 }
 0xa82   :  { %v7537_v19 = vand.u32 4294901760, %v7536_v16 }
 0xa84   :  { %9450 = vmatpush3.bf16.msra.mxu1 %v9447_v52  ;;  %v9479_v25 = vpack.c.bf16 %v7544_v13, %v7537_v19 }
 0xa85   :  { %9452 = vmatprep.subr.bf16.mxu1 %v10260_v58 }
 0xa87   :  { %9044 = vmatmul.mubr.f32.vlgmr.msra.gmra.mrb[8].mxu1 %v6963_v36 }
 0xa88   :  { %9454 = vmatpush3.bf16.msra.mxu1 %v10260_v58  ;;  %9054 = vmatprep.mubr.f32.mxu1 %v6953_v37  ;;  %v7438_v58 = vand.u32 4294901760, %v6870_v56  ;;  %v7565_v37 = vand.u32 4294901760, %v7564_v33 }
 0xa89   :  { %9456 = vmatprep.subr.bf16.mxu1 %v10262_v60 }
 0xa8a   :  { %v7548_v52 = vsub.f32 %v6870_v56, %v7438_v58 }
 0xa8c   :  { %9458 = vmatpush3.bf16.msra.mxu1 %v10262_v60  ;;  %v10308_v60 = vpack.c.bf16 %v7441_v62, %v7438_v58  ;;  %v7549_v21 = vand.u32 4294901760, %v7548_v52  ;;  %v9499_v34 = vpack.c.bf16 %v7555_v50, %v7548_v52 }
 0xa8d   :  { %9460 = vmatprep.subr.bf16.mxu1 %v10278_v20 }
 0xa8e   :  { %9516 = vmatprep.subr.bf16.mxu0 %v10308_v60  ;;  %v9531_v23 = vpack.c.bf16 %v7556_v22, %v7549_v21  ;;  %v7550_v24 = vsub.f32 %v7548_v52, %v7549_v21 }
 0xa8f   :  { %9055 = vmatmul.mubr.f32.vlgmr.msra.gmra.mrb[8].mxu1 %v6963_v36  ;;  %9518 = vmatpush3.bf16.msra.mxu0 %v10308_v60  ;;  %v7571_v36 = vsub.f32 %v7569_v26, %v7570_v30 }
 0xa90   :  { %9462 = vmatpush3.bf16.msra.mxu1 %v10278_v20  ;;  %9520 = vmatprep.subr.bf16.mxu0 %v10314_v2  ;;  %v7551_v27 = vand.u32 4294901760, %v7550_v24 }
 0xa91   :  { %9464 = vmatprep.subr.bf16.mxu1 %v10302_v55  ;;  %v7572_v38 = vand.u32 4294901760, %v7571_v36 }
 0xa92   :  { %v9483_v31 = vpack.c.bf16 %v7558_v28, %v7551_v27  ;;  %v8071_v27 = vld [vmem:[#allocation7 + $0x6] ss:$0 sm:$0xff] }
 0xa93   :  { %9522 = vmatpush3.bf16.msra.mxu0 %v10314_v2  ;;  %v9487_v40 = vpack.c.bf16 %v7572_v38, %v7565_v37 }
 0xa94   :  { %9466 = vmatpush3.bf16.msra.mxu1 %v10302_v55  ;;  %9524 = vmatprep.subr.bf16.mxu0 %v9523_v5 }
 0xa95   :  { %9468 = vmatprep.subr.bf16.mxu1 %v10308_v60 }
 0xa98   :  { %9470 = vmatpush3.bf16.msra.mxu1 %v10308_v60 }
 0xa99   :  { %9472 = vmatprep.subr.bf16.mxu1 %v10314_v2 }
 0xa9c   :  { %9474 = vmatpush3.bf16.msra.mxu1 %v10314_v2 }
 0xa9d   :  { %9476 = vmatprep.subr.bf16.mxu1 %v9475_v15 }
 0xb62   :  { %v9056_v45 = vpop.f32.mrb[8].mxu1 }
 0xb63   :  { %v9565_v47 = vadd.f32 %v9056_v45, %v8069_v44  ;;  %v7402_v49 = vpop.f32.mrb[9].mxu1 }
 0xb64   :  { %v9566_v53 = vadd.f32 %v8069_v44, %v7402_v49 }
 0xb65   :  { %v7413_v54 = vmax.f32 %v9565_v47, 0.0 }
 0xb66   :  { %v7412_v56 = vmax.f32 %v9566_v53, 0.0 }
 0xb67   :  { %v7423_v57 = vsel %vm7418_vm3, %v7413_v54, 0 }
 0xb68   :  { %v7508_v58 = vand.u32 4294901760, %v7423_v57  ;;  %v7420_v62 = vsel %vm7418_vm3, %v7412_v56, 0 }
 0xb69   :  { %v7498_v63 = vand.u32 4294901760, %v7420_v62 }
 0xb6a   :  { %v7509_v43 = vsub.f32 %v7423_v57, %v7508_v58 }
 0xb6b   :  { %v7499_v0 = vsub.f32 %v7420_v62, %v7498_v63 }
 0xb6c   :  { %v7510_v1 = vand.u32 4294901760, %v7509_v43 }
 0xb6d   :  { %v7500_v3 = vand.u32 4294901760, %v7499_v0 }
 0xb6e   :  { %v7511_v59 = vsub.f32 %v7509_v43, %v7510_v1 }
 0xb6f   :  { %9130 = vmatprep.mubr.f32.mxu0 %v7500_v3  ;;  %v7501_v46 = vsub.f32 %v7499_v0, %v7500_v3 }
 0xb70   :  { %9131 = vmatmul.mubr.f32.vlgmr.msra.gmra.mrb[12].mxu0 %v7510_v1  ;;  %v7512_v6 = vand.u32 4294901760, %v7511_v59 }
 0xb71   :  { %9526 = vmatpush3.bf16.msra.mxu0 %v9523_v5  ;;  %9149 = vmatprep.mubr.f32.mxu0 %v7498_v63  ;;  %v7502_v4 = vand.u32 4294901760, %v7501_v46 }
 0xb72   :  { %9528 = vmatprep.subr.bf16.mxu0 %v9527_v17 }
 0xb73   :  { %9073 = vmatprep.mubr.f32.mxu1 %v7502_v4 }
 0xb74   :  { %9074 = vmatmul.mubr.f32.vlgmr.msra.gmra.mrb[10].mxu1 %v7512_v6 }
 0xb75   :  { %9478 = vmatpush3.bf16.msra.mxu1 %v9475_v15  ;;  %9530 = vmatpush3.bf16.msra.mxu0 %v9527_v17 }
 0xb76   :  { %9092 = vmatprep.mubr.f32.mxu1 %v7498_v63  ;;  %9480 = vmatprep.subr.bf16.mxu1 %v9479_v25 }
 0xb77   :  { %9532 = vmatprep.subr.bf16.mxu0 %v9531_v23 }
 0xb79   :  { %9482 = vmatpush3.bf16.msra.mxu1 %v9479_v25  ;;  %9534 = vmatpush3.bf16.msra.mxu0 %v9531_v23 }
 0xb7a   :  { %9484 = vmatprep.subr.bf16.mxu1 %v9483_v31  ;;  %9536 = vmatprep.subr.bf16.mxu0 %v9535_v35 }
 0xb7d   :  { %9486 = vmatpush3.bf16.msra.mxu1 %v9483_v31  ;;  %9538 = vmatpush3.bf16.msra.mxu0 %v9535_v35  ;;  %v8072_v31 = vld [vmem:[#allocation7 + $0x7] ss:$0 sm:$0xff] }
 0xb7e   :  { %9488 = vmatprep.subr.bf16.mxu1 %v9487_v40  ;;  %9540 = vmatprep.subr.bf16.mxu0 %v10278_v20 }
 0xb80   :  { %9150 = vmatmul.mubr.f32.vlgmr.msra.gmra.mrb[12].mxu0 %v7508_v58 }
 0xb81   :  { %9490 = vmatpush3.bf16.msra.mxu1 %v9487_v40  ;;  %9542 = vmatpush3.bf16.msra.mxu0 %v10278_v20 }
 0xb82   :  { %9168 = vmatprep.mubr.f32.mxu0 %v7498_v63  ;;  %9492 = vmatprep.subr.bf16.mxu1 %v9491_v39 }
 0xb83   :  { %9544 = vmatprep.subr.bf16.mxu0 %v10302_v55 }
 0xb84   :  { %9093 = vmatmul.mubr.f32.vlgmr.msra.gmra.mrb[10].mxu1 %v7508_v58 }
 0xb85   :  { %9494 = vmatpush3.bf16.msra.mxu1 %v9491_v39  ;;  %9111 = vmatprep.mubr.f32.mxu1 %v7499_v0 }
 0xb86   :  { %9546 = vmatpush3.bf16.msra.mxu0 %v10302_v55  ;;  %9496 = vmatprep.subr.bf16.mxu1 %v9495_v41 }
 0xb87   :  { %9548 = vmatprep.subr.bf16.mxu0 %v10308_v60 }
 0xb89   :  { %9498 = vmatpush3.bf16.msra.mxu1 %v9495_v41 }
 0xb8a   :  { %9550 = vmatpush3.bf16.msra.mxu0 %v10308_v60  ;;  %9500 = vmatprep.subr.bf16.mxu1 %v9499_v34 }
 0xb8b   :  { %9552 = vmatprep.subr.bf16.mxu0 %v10314_v2 }
 0xb8d   :  { %9502 = vmatpush3.bf16.msra.mxu1 %v9499_v34 }
 0xb8e   :  { %9554 = vmatpush3.bf16.msra.mxu0 %v10314_v2  ;;  %9504 = vmatprep.subr.bf16.mxu1 %v9503_v42 }
 0xb91   :  { %9169 = vmatmul.mubr.f32.vlgmr.msra.gmra.mrb[12].mxu0 %v7508_v58  ;;  %9506 = vmatpush3.bf16.msra.mxu1 %v9503_v42 }
 0xb94   :  { %9112 = vmatmul.mubr.f32.vlgmr.msra.gmra.mrb[10].mxu1 %v7509_v43 }
 0xc64   :  { %v9170_v20 = vpop.f32.mrb[12].mxu0 }
 0xc65   :  { %v7995_v5 = vpop.f32.mrb[13].mxu0 }
 0xc67   :  { %v9113_v55 = vpop.f32.mrb[10].mxu1 }
 0xc68   :  { %v9567_v8 = vadd.f32 %v9113_v55, %v8070_v7  ;;  %v7719_v61 = vpop.f32.mrb[11].mxu1 }
 0xc69   :  { %v9569_v9 = vadd.f32 %v8070_v7, %v7719_v61 }
 0xc6a   :  { %v9568_v10 = vadd.f32 %v9567_v8, %v9170_v20 }
 0xc6b   :  { %v9570_v11 = vadd.f32 %v9569_v9, %v7995_v5 }
 0xc6c   :  { %v8006_v60 = vadd.f32 %v9568_v10, %v10284_v32 }
 0xc6d   :  { %v8005_v12 = vadd.f32 %v9570_v11, %v10286_v51 }
 0xc6e   :  { %v8010_v15 = vsel %vm76_vm0, %v8006_v60, 0.0 }
 0xc6f   :  { %8011 = vadd.xlane.f32.xlu0 %v8010_v15  ;;  %v8007_v2 = vsel %vm76_vm0, %v8005_v12, 0.0 }
 0xc70   :  { %8008 = vadd.xlane.f32.xlu1 %v8007_v2 }
 0xcfc   :  { %v8012_v16 = vpop.xlane.xlu0 %8011 }
 0xcfd   :  { %v8014_v52 = vmul.f32 0.03125, %v8012_v16  ;;  %v8009_v50 = vpop.xlane.xlu1 %8008 }
 0xcfe   :  { %v8013_v17 = vmul.f32 0.03125, %v8009_v50 }
 0xcff   :  { %v8016_v18 = vsub.f32 %v8006_v60, %v8014_v52 }
 0xd00   :  { %v8015_v19 = vsub.f32 %v8005_v12, %v8013_v17 }
 0xd01   :  { %v8018_v21 = vmul.f32 %v8016_v18, %v8016_v18 }
 0xd02   :  { %v8017_v22 = vmul.f32 %v8015_v19, %v8015_v19 }
 0xd03   :  { %v8022_v13 = vsel %vm76_vm0, %v8018_v21, 0.0 }
 0xd04   :  { %8023 = vadd.xlane.f32.xlu0 %v8022_v13  ;;  %v8019_v32 = vsel %vm76_vm0, %v8017_v22, 0.0 }
 0xd05   :  { %8020 = vadd.xlane.f32.xlu1 %v8019_v32 }
 0xd91   :  { %v8024_v51 = vpop.xlane.xlu0 %8023 }
 0xd92   :  { %v8026_v23 = vmul.f32 0.03125, %v8024_v51  ;;  %v8021_v24 = vpop.xlane.xlu1 %8020 }
 0xd93   :  { %v8025_v14 = vmul.f32 0.03125, %v8021_v24 }
 0xd94   :  { %v8028_v48 = vadd.f32 1e-05, %v8026_v23 }
 0xd95   :  { %v8027_v25 = vadd.f32 1e-05, %v8025_v14 }
 0xd96   :  { %9778 = vrsqrt.f32 %v8028_v48 }
 0xd97   :  { %9780 = vrsqrt.f32 %v8027_v25 }
 0xda0   :  { %v9779_v26 = vpop.eup %9778 }
 0xda1   :  { %v9781_v28 = vpop.eup %9780  ;;  %v8032_v29 = vmul.f32 %v9779_v26, %v8016_v18 }
 0xda2   :  { %v8031_v30 = vmul.f32 %v9781_v28, %v8015_v19 }
 0xda3   :  { %v8038_v33 = vmul.f32 %v8071_v27, %v8032_v29 }
 0xda4   :  { %v8037_v35 = vmul.f32 %v8071_v27, %v8031_v30 }
 0xda5   :  { %v8044_v36 = vadd.f32 %v8072_v31, %v8038_v33 }
 0xda6   :  { %v8043_v37 = vadd.f32 %v8072_v31, %v8037_v35 }
 0xda7   :  { %8046 = vst.msk [vmem:[#allocation8 + $0x8] sm:$0xff] %vm76_vm0, %v8044_v36 }
 0xda8   :  { %8045 = vst.msk [vmem:[#allocation8] sm:$0xff] %vm76_vm0, %v8043_v37 }
 0xda9   :  { %9861 = shalt.err (!%p9858_p0)
}
 0xdaa   :  { %s9862_s10 = scalar_lea.hbm %s10360_s3, 256 }
 0xdab   :  { %p9863_p1 = scmp.ne.s32.totalorder %s10360_s3, %s9862_s10  ;;  %p9866_p2 = scmp.lt.u32.totalorder %s9862_s10, %s10360_s3 }
 0xdad   :  { %p9868_p3 = pnand %p9866_p2, %p9863_p1 }
 0xdaf   :  { %9871 = shalt.err (!%p9868_p3)
}
 0xdb0   :  { %8058 = dma.vmem_to_hbm [thread:$0]  %s8053_s7, 256, %s10360_s3, [#allocation4], %s9880_s24, %s9880_s24, %s9881_s25  }
 0xdb1   :  { %9876 = dma.done.wait [#allocation4], 256  }
 0xdb2   :  { %9877 = vsyncadd [#allocation4], 4294967040 }
 0xdb3   :  { %8062 = vsyncpa [#allocation3], 1 }
 0xdb4   :  { %8063 = vsyncpa [#allocation6], 1 }
 0xdb5   :  { %8064 = vsyncpa [#allocation4], 1 }

</bundles_post_ra>
